<compile_context>
chip_gen: v5e
topology: v5e:2x2
jax: 0.10.0
libtpu: 0.0.40
codegen_flags: <defaults>
</compile_context>

<pallas_src>
import jax
import jax.numpy as jnp
from jax.experimental import pallas as pl
from jax.experimental.pallas import tpu as pltpu


def _relu_conv1x1_relu_kernel(x_ref, w_ref, b_ref, o_ref):
    # x_ref: (1, C_in, HW)   w_ref: (Ct, C_in)   b_ref: (Ct, 1)   o_ref: (1, Ct, HW)
    x = jnp.maximum(x_ref[0], 0.0)                                   # relu1
    y = jnp.dot(w_ref[...], x, preferred_element_type=jnp.float32)   # 1x1 conv (MXU)
    y = y + b_ref[...]                                               # bias (bcast over lanes)
    o_ref[0] = jnp.maximum(y, 0.0).astype(o_ref.dtype)               # relu2


def _num_cout_tiles(c_out):
    """v7x has 2 TensorCores per chip -> give each an independent C_out slab.
    v5e/v6e are single-TC, so extra grid steps are pure overhead."""
    try:
        kind = jax.devices()[0].device_kind.lower()
    except Exception:
        kind = ""
    if ("v7" in kind) and c_out % 16 == 0:   # two slabs, each a multiple of 8 sublanes
        return 2
    return 1


def relu_conv1x1_relu(x_nchw, weight, bias):
    """x_nchw: (N, C_in, H, W); weight: (C_out, C_in, 1, 1); bias: (C_out,)."""
    N, C_in, H, W = x_nchw.shape
    C_out = weight.shape[0]
    HW = H * W

    n_ct = _num_cout_tiles(C_out)
    ct = C_out // n_ct                      # C_out block (64 or 32); multiple of 8

    # NCHW-native view, no padding: full H*W extent sits on the 128-lane axis.
    x_flat = x_nchw.reshape(N, C_in, HW)
    w_mat = weight.reshape(C_out, C_in).astype(jnp.float32)   # (C_out, C_in)
    b_mat = bias.reshape(C_out, 1).astype(jnp.float32)        # (C_out, 1)

    flops = 2 * N * C_out * C_in * HW
    bytes_accessed = 4 * (N * C_in * HW + C_out * C_in + C_out + N * C_out * HW)

    out = pl.pallas_call(
        _relu_conv1x1_relu_kernel,
        out_shape=jax.ShapeDtypeStruct((N, C_out, HW), jnp.float32),
        grid_spec=pltpu.PrefetchScalarGridSpec(
            num_scalar_prefetch=0,
            grid=(N, n_ct),
            in_specs=[
                pl.BlockSpec((1, C_in, HW), lambda n, j: (n, 0, 0)),   # full-extent lanes
                pl.BlockSpec((ct, C_in), lambda n, j: (j, 0)),         # weight slab
                pl.BlockSpec((ct, 1), lambda n, j: (j, 0)),            # bias slab
            ],
            out_specs=pl.BlockSpec((1, ct, HW), lambda n, j: (n, j, 0)),
        ),
        compiler_params=pltpu.CompilerParams(
            dimension_semantics=("parallel", "parallel")),
        cost_estimate=pl.CostEstimate(
            flops=flops, transcendentals=0, bytes_accessed=bytes_accessed),
    )(x_flat, w_mat, b_mat)

    # (N, C_out, H*W) -> (N, C_out, H, W): contiguous reshape, no copy.
    return out.reshape(N, C_out, H, W)


def reference(x_nchw, weight, bias):
    x = jnp.maximum(x_nchw, 0.0)
    w = weight.reshape(weight.shape[0], weight.shape[1])   # (C_out, C_in)
    y = jnp.einsum("nchw,oc->nohw", x, w) + bias[None, :, None, None]
    return jnp.maximum(y, 0.0)


if __name__ == "__main__":
    key = jax.random.PRNGKey(0)
    kx, kw, kb = jax.random.split(key, 3)

    N, C_in, H, W = 1, 16, 54, 54   # shape from the PyTorch module spec
    C_out = 64

    x = jax.random.normal(kx, (N, C_in, H, W), dtype=jnp.float32)
    # Deterministic init matching Conv2d(16, 64, kernel_size=1) parameter shapes.
    fan_in = C_in * 1 * 1
    bound = 1.0 / (fan_in ** 0.5)
    weight = jax.random.uniform(kw, (C_out, C_in, 1, 1), minval=-bound, maxval=bound,
                                dtype=jnp.float32)
    bias = jax.random.uniform(kb, (C_out,), minval=-bound, maxval=bound,
                              dtype=jnp.float32)

    out = relu_conv1x1_relu(x, weight, bias)
    out = jax.block_until_ready(out)

    ref = reference(x, weight, bias)
    assert out.shape == (N, C_out, H, W), out.shape
    assert jnp.allclose(out, ref, atol=1e-4, rtol=1e-4), "mismatch vs reference"
    print("KERNEL_OK")
</pallas_src>

<mosaic_0001>
module attributes {stable_mosaic.version = 11 : i64} {
  func.func @_relu_conv1x1_relu_kernel(%arg0: i32, %arg1: i32, %arg2: memref<1x16x2916xf32, #tpu.memory_space<vmem>>, %arg3: memref<64x16xf32, #tpu.memory_space<vmem>>, %arg4: memref<64x1xf32, #tpu.memory_space<vmem>>, %arg5: memref<1x64x2916xf32, #tpu.memory_space<vmem>>) attributes {dimension_semantics = [#tpu.dimension_semantics<parallel>, #tpu.dimension_semantics<parallel>], iteration_bounds = array<i64: 1, 1>, scalar_prefetch = 0 : i64, scratch_operands = 0 : i64, tpu.core_type = #tpu.core_type<tc>, window_params = [{transform_indices = @transform_0, window_bounds = array<i64: 1, 16, 2916>}, {transform_indices = @transform_1, window_bounds = array<i64: 64, 16>}, {transform_indices = @transform_2, window_bounds = array<i64: 64, 1>}, {transform_indices = @transform_3, window_bounds = array<i64: 1, 64, 2916>}]} {
    %c0 = arith.constant 0 : index
    %c0_0 = arith.constant 0 : index
    %c0_1 = arith.constant 0 : index
    %0 = vector.load %arg2[%c0, %c0_0, %c0_1] : memref<1x16x2916xf32, #tpu.memory_space<vmem>>, vector<1x16x2916xf32>
    %1 = vector.shape_cast %0 : vector<1x16x2916xf32> to vector<16x2916xf32>
    %cst = arith.constant 0.000000e+00 : f32
    %2 = vector.broadcast %cst : f32 to vector<16x2916xf32>
    %3 = arith.maximumf %1, %2 : vector<16x2916xf32>
    %c0_2 = arith.constant 0 : index
    %c0_3 = arith.constant 0 : index
    %4 = vector.load %arg3[%c0_2, %c0_3] : memref<64x16xf32, #tpu.memory_space<vmem>>, vector<64x16xf32>
    %cst_4 = arith.constant dense<0.000000e+00> : vector<64x2916xf32>
    %5 = tpu.matmul %4, %3, %cst_4 {dimension_numbers = #tpu.dot_dimension_numbers<[1], [0], [0], [1], [0, 0, 1, 1], [], []>} : vector<64x16xf32>, vector<16x2916xf32>, vector<64x2916xf32> -> vector<64x2916xf32>
    %c0_5 = arith.constant 0 : index
    %c0_6 = arith.constant 0 : index
    %6 = vector.load %arg4[%c0_5, %c0_6] : memref<64x1xf32, #tpu.memory_space<vmem>>, vector<64x1xf32>
    %7 = vector.broadcast %6 : vector<64x1xf32> to vector<64x2916xf32>
    %8 = arith.addf %5, %7 : vector<64x2916xf32>
    %cst_7 = arith.constant 0.000000e+00 : f32
    %9 = vector.broadcast %cst_7 : f32 to vector<64x2916xf32>
    %10 = arith.maximumf %8, %9 : vector<64x2916xf32>
    %c0_8 = arith.constant 0 : index
    %c0_9 = arith.constant 0 : index
    %c0_10 = arith.constant 0 : index
    %11 = vector.load %arg5[%c0_8, %c0_9, %c0_10] : memref<1x64x2916xf32, #tpu.memory_space<vmem>>, vector<1x64x2916xf32>
    %12 = vector.shape_cast %11 : vector<1x64x2916xf32> to vector<64x2916xf32>
    %13 = vector.shape_cast %10 : vector<64x2916xf32> to vector<1x64x2916xf32>
    tpu.vector_store %arg5[%c0_8, %c0_9, %c0_10], %13 {strides = array<i32>} : memref<1x64x2916xf32, #tpu.memory_space<vmem>>, vector<1x64x2916xf32>,
    return
  }
  func.func @transform_0(%arg0: i32, %arg1: i32) -> (i32, i32, i32) {
    %c0_i32 = arith.constant 0 : i32
    %c0_i32_0 = arith.constant 0 : i32
    %c0_i32_1 = arith.constant 0 : i32
    return %arg0, %c0_i32, %c0_i32_0 : i32, i32, i32
  }
  func.func @transform_1(%arg0: i32, %arg1: i32) -> (i32, i32) {
    %c0_i32 = arith.constant 0 : i32
    %c0_i32_0 = arith.constant 0 : i32
    return %arg1, %c0_i32 : i32, i32
  }
  func.func @transform_2(%arg0: i32, %arg1: i32) -> (i32, i32) {
    %c0_i32 = arith.constant 0 : i32
    %c0_i32_0 = arith.constant 0 : i32
    return %arg1, %c0_i32 : i32, i32
  }
  func.func @transform_3(%arg0: i32, %arg1: i32) -> (i32, i32, i32) {
    %c0_i32 = arith.constant 0 : i32
    %c0_i32_0 = arith.constant 0 : i32
    return %arg0, %arg1, %c0_i32 : i32, i32, i32
  }
}

</mosaic_0001>

<bundles_post_ra>
// kernel: tpu_custom_call.1
= control target key start
LH: loop header
LB: loop body
LE: loop exit
PB: predicated region body
PF: predicated region fallthrough
CT: control target
= control target key end

     0   :  { %8 = vsyncpa [#allocation3], 0  ;;  %s2486_s0 = inlined_call_operand.hbm [shape: f32[1,16,2916], index: 0, kind: input, shape index: {}]   ;;  %s2487_s1 = inlined_call_operand.vmem [shape: f32[64,16], index: 1, kind: input, shape index: {}]   ;;  %s2488_s2 = inlined_call_operand.vmem [shape: f32[64,1], index: 2, kind: input, shape index: {}]   ;;  %s2489_s3 = inlined_call_operand.hbm [shape: f32[1,64,2916], index: 3, kind: output, shape index: {}]  }
   0x1   :  { %9 = vsyncpa [#allocation4], 0  ;;  %s14_s14 = sshll.u32 %s2486_s0, 4  ;;  %s1793_s15 = smov [#allocation2]   ;;  %s15_s14 = int_to_ptr.hbm [resolvable:$true] %s14_s14 }
   0x2   :  { %s16_s16 = sshll.u32 %s1793_s15, 4  ;;  %s1794_s17 = smov 2944   ;;  %s17_s16 = int_to_ptr.vmem [resolvable:$true] %s16_s16 }
   0x3   :  { %s1795_s18 = smov 184  }
   0x4   :  { %22 = dma.hbm_to_vmem [thread:$0]  %s15_s14, 5888, %s17_s16, [#allocation3], %s1794_s17, %s1794_s17, %s1795_s18  }
   0x5   :  { %1789 = dma.done.wait [#allocation3], 5888  }
   0x6   :  { %1790 = vsyncadd [#allocation3], 4294961408  ;;  %v1796_v0 = vmov 0   ;;  %v54_v1 = vld [vmem:[#allocation2 + $0xb8] sm:$0xff]  ;;  %v55_v2 = vld [vmem:[#allocation2 + $0xc0] sm:$0xff]  ;;  %vm179_vm0 = vcmask 130048  }
   0x7   :  { %1730 = vset.pattern.permute.xlu0 %v1796_v0  ;;  %1731 = vset.pattern.permute.xlu1 %v1796_v0  ;;  %v56_v3 = vld [vmem:[#allocation2 + $0xc8] sm:$0xff]  ;;  %v100_v4 = vmax.f32 %v54_v1, 0.0  ;;  %v101_v5 = vmax.f32 %v55_v2, 0.0  ;;  %v31_v7 = vld [vmem:[#allocation2] sm:$0xff]  ;;  %v33_v9 = vld [vmem:[#allocation2 + $0x10] sm:$0xff]  ;;  %vm1353_vm1 = vcmask 818176  }
   0x8   :  { %1732 = vset.pattern.permute.xlu2 %v1796_v0  ;;  %v102_v6 = vmax.f32 %v56_v3, 0.0  ;;  %v32_v8 = vld [vmem:[#allocation2 + $0x8] sm:$0xff]  ;;  %v77_v10 = vmax.f32 %v31_v7, 0.0  ;;  %v79_v12 = vmax.f32 %v33_v9, 0.0  ;;  %v58_v14 = vld [vmem:[#allocation2 + $0xd8] sm:$0xff]  ;;  %v1827_v15 = vld [vmem:[%s2487_s1] sm:$0xff] }
   0x9   :  { %v78_v11 = vmax.f32 %v32_v8, 0.0  ;;  %218 = vmatpush.msra.mxu0 %v100_v4  ;;  %1719 = vmatpush.msra.mxu3 %v100_v4  ;;  %v60_v13 = vld [vmem:[#allocation2 + $0xe8] sm:$0xff]  ;;  %v1832_v16 = vld [vmem:[%s2487_s1 + $0x30] sm:$0xff]  ;;  %v59_v17 = vld [vmem:[#allocation2 + $0xe0] sm:$0xff]  ;;  %v104_v20 = vmax.f32 %v58_v14, 0.0  ;;  %s1522_s15 = sshll.u32 %s2489_s3, 4  ;;  %s1523_s15 = int_to_ptr.hbm [resolvable:$true] %s1522_s15 }
   0xa   :  { %259 = vmatpush.msra.mxu1 %v101_v5  ;;  %300 = vmatpush.msra.mxu2 %v102_v6  ;;  %v106_v18 = vmax.f32 %v60_v13, 0.0  ;;  %v131_v19 = vld [vmem:[%s2488_s2] sm:$0xff]  ;;  %v37_v21 = vld [vmem:[#allocation2 + $0x30] sm:$0xff]  ;;  %v105_v22 = vmax.f32 %v59_v17, 0.0  ;;  %v36_v24 = vld [vmem:[#allocation2 + $0x28] sm:$0xff] }
   0xb   :  { %219 = vmatpush.msra.mxu0 %v77_v10  ;;  %1720 = vmatpush.msra.mxu3 %v77_v10  ;;  %v35_v23 = vld [vmem:[#allocation2 + $0x20] sm:$0xff]  ;;  %v133_v25 = vld [vmem:[%s2488_s2 + $0x10] sm:$0xff]  ;;  %v83_v26 = vmax.f32 %v37_v21, 0.0  ;;  %v82_v28 = vmax.f32 %v36_v24, 0.0  ;;  %v1851_v29 = vld [vmem:[%s2487_s1 + $0x8] sm:$0xff] }
   0xc   :  { %260 = vmatpush.msra.mxu1 %v78_v11  ;;  %301 = vmatpush.msra.mxu2 %v79_v12  ;;  %v81_v27 = vmax.f32 %v35_v23, 0.0  ;;  %v1856_v30 = vld [vmem:[%s2487_s1 + $0x38] sm:$0xff]  ;;  %v132_v31 = vld [vmem:[%s2488_s2 + $0x8] sm:$0xff]  ;;  %v57_v33 = vld [vmem:[#allocation2 + $0xd0] sm:$0xff] }
   0xd   :  { %1535 = vmatmul.msk.f32.vlgmr.msra.gmra.mxu0 %vm179_vm0, %v1827_v15  ;;  %1541 = vmatmul.msk.f32.vlgmr.msra.gmra.mxu3 %vm179_vm0, %v1832_v16  ;;  %v134_v32 = vld [vmem:[%s2488_s2 + $0x18] sm:$0xff]  ;;  %v1875_v35 = vld [vmem:[%s2487_s1 + $0x10] sm:$0xff]  ;;  %v103_v36 = vmax.f32 %v57_v33, 0.0  ;;  %v64_v40 = vld [vmem:[#allocation2 + $0x108] sm:$0xff] }
   0xe   :  { %1721 = vmatpush.msrb.mxu3 %v101_v5  ;;  %1543 = vmatmul.msk.f32.vlgmr.msra.gmra.mxu1 %vm179_vm0, %v1827_v15  ;;  %v34_v34 = vld [vmem:[#allocation2 + $0x18] sm:$0xff]  ;;  %v137_v37 = vld [vmem:[%s2488_s2 + $0x30] sm:$0xff]  ;;  %v110_v42 = vmax.f32 %v64_v40, 0.0  ;;  %v63_v44 = vld [vmem:[#allocation2 + $0x100] sm:$0xff] }
   0xf   :  { %1551 = vmatmul.msk.f32.vlgmr.msra.gmra.mxu2 %vm179_vm0, %v1827_v15  ;;  %141 = vperm.xlu0 %1730, %v131_v19   ;;  %v80_v38 = vmax.f32 %v34_v34, 0.0  ;;  %v138_v39 = vld [vmem:[%s2488_s2 + $0x38] sm:$0xff]  ;;  %v109_v45 = vmax.f32 %v63_v44, 0.0  ;;  %v61_v47 = vld [vmem:[#allocation2 + $0xf0] sm:$0xff]  ;;  %v1907_v48 = vld [vmem:[%s2487_s1 + $0x20] sm:$0xff] }
  0x10   :  { %464 = vmatpush.msrb.mxu2 %v106_v18  ;;  %382 = vmatpush.msrb.mxu0 %v104_v20  ;;  %v62_v41 = vld [vmem:[#allocation2 + $0xf8] sm:$0xff]  ;;  %v107_v49 = vmax.f32 %v61_v47, 0.0  ;;  %v1920_v50 = vld [vmem:[%s2487_s1 + $0x28] sm:$0xff]  ;;  %v135_v51 = vld [vmem:[%s2488_s2 + $0x20] sm:$0xff] }
  0x11   :  { %423 = vmatpush.msrb.mxu1 %v105_v22  ;;  %1722 = vmatpush.msrb.mxu3 %v78_v11  ;;  %v108_v43 = vmax.f32 %v62_v41, 0.0  ;;  %v1894_v46 = vld [vmem:[%s2487_s1 + $0x18] sm:$0xff]  ;;  %v41_v53 = vld [vmem:[#allocation2 + $0x50] sm:$0xff]  ;;  %v136_v54 = vld [vmem:[%s2488_s2 + $0x28] sm:$0xff] }
  0x12   :  { %151 = vperm.xlu1 %1731, %v133_v25   ;;  %465 = vmatpush.msrb.mxu2 %v83_v26  ;;  %v38_v52 = vld [vmem:[#allocation2 + $0x38] sm:$0xff]  ;;  %v87_v56 = vmax.f32 %v41_v53, 0.0  ;;  %v39_v57 = vld [vmem:[#allocation2 + $0x40] sm:$0xff]  ;;  %v40_v58 = vld [vmem:[#allocation2 + $0x48] sm:$0xff] }
  0x13   :  { %1723 = vmatpush.msra.mxu3 %v102_v6  ;;  %383 = vmatpush.msrb.mxu0 %v81_v27  ;;  %v84_v55 = vmax.f32 %v38_v52, 0.0  ;;  %v85_v59 = vmax.f32 %v39_v57, 0.0  ;;  %v86_v60 = vmax.f32 %v40_v58, 0.0  ;;  %v65_v61 = vld [vmem:[#allocation2 + $0x110] sm:$0xff]  ;;  %v68_v62 = vld [vmem:[#allocation2 + $0x128] sm:$0xff]  ;;  %v66_v1 = vld [vmem:[#allocation2 + $0x118] sm:$0xff] }
  0x14   :  { %424 = vmatpush.msrb.mxu1 %v82_v28  ;;  %628 = vmatpush.msra.mxu2 %v110_v42  ;;  %v111_v63 = vmax.f32 %v65_v61, 0.0  ;;  %v114_v0 = vmax.f32 %v68_v62, 0.0  ;;  %v67_v2 = vld [vmem:[#allocation2 + $0x120] sm:$0xff]  ;;  %v112_v3 = vmax.f32 %v66_v1, 0.0  ;;  %v42_v6 = vld [vmem:[#allocation2 + $0x58] sm:$0xff]  ;;  %v45_v7 = vld [vmem:[#allocation2 + $0x70] sm:$0xff] }
  0x15   :  { %1724 = vmatpush.msra.mxu3 %v79_v12  ;;  %1536 = vmatmul.msk.f32.gmra.mxu0 %vm179_vm0, %v1851_v29  ;;  %v113_v4 = vmax.f32 %v67_v2, 0.0  ;;  %v88_v8 = vmax.f32 %v42_v6, 0.0  ;;  %v91_v9 = vmax.f32 %v45_v7, 0.0  ;;  %v43_v12 = vld [vmem:[#allocation2 + $0x60] sm:$0xff]  ;;  %v44_v13 = vld [vmem:[#allocation2 + $0x68] sm:$0xff] }
  0x16   :  { %1542 = vmatmul.msk.f32.gmra.mxu3 %vm179_vm0, %v1856_v30  ;;  %1544 = vmatmul.msk.f32.gmra.mxu1 %vm179_vm0, %v1851_v29  ;;  %v89_v17 = vmax.f32 %v43_v12, 0.0  ;;  %v90_v18 = vmax.f32 %v44_v13, 0.0 }
  0x17   :  { %1552 = vmatmul.msk.f32.gmra.mxu2 %vm179_vm0, %v1851_v29  ;;  %146 = vperm.xlu0 %1730, %v132_v31  }
  0x18   :  { %546 = vmatpush.msra.mxu0 %v108_v43  ;;  %587 = vmatpush.msra.mxu1 %v109_v45 }
  0x19   :  { %161 = vperm.xlu2 %1732, %v135_v51   ;;  %629 = vmatpush.msra.mxu2 %v87_v56 }
  0x1a   :  { %156 = vperm.xlu1 %1731, %v134_v32   ;;  %547 = vmatpush.msra.mxu0 %v85_v59  ;;  %v69_v59 = vld [vmem:[#allocation2 + $0x130] sm:$0xff] }
  0x1b   :  { %588 = vmatpush.msra.mxu1 %v86_v60  ;;  %v72_v60 = vld [vmem:[#allocation2 + $0x148] sm:$0xff] }
  0x1d   :  { %1537 = vmatmul.msk.f32.gmra.mxu0 %vm179_vm0, %v1875_v35 }
  0x1e   :  { %1549 = vmatmul.msk.f32.vlgmr.msrb.gmra.mxu3 %vm179_vm0, %v1832_v16  ;;  %1545 = vmatmul.msk.f32.gmra.mxu1 %vm179_vm0, %v1875_v35 }
  0x1f   :  { %341 = vmatpush.msrb.mxu3 %v103_v36  ;;  %1553 = vmatmul.msk.f32.gmra.mxu2 %vm179_vm0, %v1875_v35 }
  0x20   :  { %171 = vperm.xlu0 %1730, %v137_v37  }
  0x21   :  { %342 = vmatpush.msrb.mxu3 %v80_v38  ;;  %166 = vperm.xlu2 %1732, %v136_v54  }
  0x22   :  { %176 = vperm.xlu1 %1731, %v138_v39  }
  0x25   :  { %1538 = vmatmul.msk.f32.gmra.mxu0 %vm179_vm0, %v1894_v46 }
  0x26   :  { %1550 = vmatmul.msk.f32.gmra.mxu3 %vm179_vm0, %v1856_v30  ;;  %1546 = vmatmul.msk.f32.gmra.mxu1 %vm179_vm0, %v1894_v46 }
  0x27   :  { %1554 = vmatmul.msk.f32.gmra.mxu2 %vm179_vm0, %v1894_v46 }
  0x2d   :  { %1539 = vmatmul.msk.f32.gmra.mxu0 %vm179_vm0, %v1907_v48 }
  0x2e   :  { %1557 = vmatmul.msk.f32.vlgmr.msra.gmra.mxu3 %vm179_vm0, %v1832_v16  ;;  %1547 = vmatmul.msk.f32.gmra.mxu1 %vm179_vm0, %v1907_v48 }
  0x2f   :  { %505 = vmatpush.msra.mxu3 %v107_v49  ;;  %1555 = vmatmul.msk.f32.gmra.mxu2 %vm179_vm0, %v1907_v48 }
  0x31   :  { %506 = vmatpush.msra.mxu3 %v84_v55 }
  0x35   :  { %1540 = vmatmul.msk.f32.gmra.mxu0 %vm179_vm0, %v1920_v50 }
  0x36   :  { %1558 = vmatmul.msk.f32.gmra.mxu3 %vm179_vm0, %v1856_v30  ;;  %1548 = vmatmul.msk.f32.gmra.mxu1 %vm179_vm0, %v1920_v50 }
  0x37   :  { %1556 = vmatmul.msk.f32.gmra.mxu2 %vm179_vm0, %v1920_v50 }
  0x3d   :  { %1567 = vmatmul.msk.f32.vlgmr.msrb.gmra.mxu0 %vm179_vm0, %v1827_v15 }
  0x3e   :  { %1559 = vmatmul.msk.f32.vlgmr.msrb.gmra.mxu3 %vm179_vm0, %v1827_v15  ;;  %1575 = vmatmul.msk.f32.vlgmr.msrb.gmra.mxu1 %vm179_vm0, %v1827_v15 }
  0x3f   :  { %1583 = vmatmul.msk.f32.vlgmr.msrb.gmra.mxu2 %vm179_vm0, %v1827_v15  ;;  %669 = vmatpush.msrb.mxu3 %v111_v63  ;;  %v115_v63 = vmax.f32 %v69_v59, 0.0 }
  0x40   :  { %792 = vmatpush.msrb.mxu2 %v114_v0  ;;  %710 = vmatpush.msrb.mxu0 %v112_v3  ;;  %v118_v0 = vmax.f32 %v72_v60, 0.0 }
  0x41   :  { %751 = vmatpush.msrb.mxu1 %v113_v4  ;;  %670 = vmatpush.msrb.mxu3 %v88_v8 }
  0x42   :  { %793 = vmatpush.msrb.mxu2 %v91_v9  ;;  %711 = vmatpush.msrb.mxu0 %v89_v17  ;;  %v70_v17 = vld [vmem:[#allocation2 + $0x138] sm:$0xff] }
  0x43   :  { %752 = vmatpush.msrb.mxu1 %v90_v18  ;;  %v71_v18 = vld [vmem:[#allocation2 + $0x140] sm:$0xff] }
  0x45   :  { %1568 = vmatmul.msk.f32.gmra.mxu0 %vm179_vm0, %v1851_v29 }
  0x46   :  { %1560 = vmatmul.msk.f32.gmra.mxu3 %vm179_vm0, %v1851_v29  ;;  %1576 = vmatmul.msk.f32.gmra.mxu1 %vm179_vm0, %v1851_v29 }
  0x47   :  { %1584 = vmatmul.msk.f32.gmra.mxu2 %vm179_vm0, %v1851_v29 }
  0x4d   :  { %1569 = vmatmul.msk.f32.gmra.mxu0 %vm179_vm0, %v1875_v35 }
  0x4e   :  { %1561 = vmatmul.msk.f32.gmra.mxu3 %vm179_vm0, %v1875_v35  ;;  %1577 = vmatmul.msk.f32.gmra.mxu1 %vm179_vm0, %v1875_v35 }
  0x4f   :  { %1585 = vmatmul.msk.f32.gmra.mxu2 %vm179_vm0, %v1875_v35 }
  0x55   :  { %1570 = vmatmul.msk.f32.gmra.mxu0 %vm179_vm0, %v1894_v46 }
  0x56   :  { %1562 = vmatmul.msk.f32.gmra.mxu3 %vm179_vm0, %v1894_v46  ;;  %1578 = vmatmul.msk.f32.gmra.mxu1 %vm179_vm0, %v1894_v46 }
  0x57   :  { %1586 = vmatmul.msk.f32.gmra.mxu2 %vm179_vm0, %v1894_v46 }
  0x5d   :  { %1571 = vmatmul.msk.f32.gmra.mxu0 %vm179_vm0, %v1907_v48 }
  0x5e   :  { %1563 = vmatmul.msk.f32.gmra.mxu3 %vm179_vm0, %v1907_v48  ;;  %1579 = vmatmul.msk.f32.gmra.mxu1 %vm179_vm0, %v1907_v48 }
  0x5f   :  { %1587 = vmatmul.msk.f32.gmra.mxu2 %vm179_vm0, %v1907_v48 }
  0x65   :  { %1572 = vmatmul.msk.f32.gmra.mxu0 %vm179_vm0, %v1920_v50 }
  0x66   :  { %1564 = vmatmul.msk.f32.gmra.mxu3 %vm179_vm0, %v1920_v50  ;;  %1580 = vmatmul.msk.f32.gmra.mxu1 %vm179_vm0, %v1920_v50 }
  0x67   :  { %1588 = vmatmul.msk.f32.gmra.mxu2 %vm179_vm0, %v1920_v50 }
  0x6d   :  { %1573 = vmatmul.msk.f32.gmra.mxu0 %vm179_vm0, %v1832_v16 }
  0x6e   :  { %1565 = vmatmul.msk.f32.gmra.mxu3 %vm179_vm0, %v1832_v16  ;;  %1581 = vmatmul.msk.f32.gmra.mxu1 %vm179_vm0, %v1832_v16 }
  0x6f   :  { %1589 = vmatmul.msk.f32.gmra.mxu2 %vm179_vm0, %v1832_v16 }
  0x73   :  { %v2072_v12 = vpop.permute.xlu2 %161 }
  0x75   :  { %1574 = vmatmul.msk.f32.gmra.mxu0 %vm179_vm0, %v1856_v30 }
  0x76   :  { %1566 = vmatmul.msk.f32.gmra.mxu3 %vm179_vm0, %v1856_v30  ;;  %1582 = vmatmul.msk.f32.gmra.mxu1 %vm179_vm0, %v1856_v30 }
  0x77   :  { %1590 = vmatmul.msk.f32.gmra.mxu2 %vm179_vm0, %v1856_v30 }
  0x7d   :  { %1599 = vmatmul.msk.f32.vlgmr.msra.gmra.mxu0 %vm179_vm0, %v1827_v15 }
  0x7e   :  { %1591 = vmatmul.msk.f32.vlgmr.msra.gmra.mxu3 %vm179_vm0, %v1827_v15  ;;  %1607 = vmatmul.msk.f32.vlgmr.msra.gmra.mxu1 %vm179_vm0, %v1827_v15 }
  0x7f   :  { %1615 = vmatmul.msk.f32.vlgmr.msra.gmra.mxu2 %vm179_vm0, %v1827_v15  ;;  %833 = vmatpush.msra.mxu3 %v115_v63 }
  0x80   :  { %956 = vmatpush.msra.mxu2 %v118_v0 }
  0x81   :  { %v2008_v5 = vpop.permute.xlu0 %141 }
  0x84   :  { %v2010_v10 = vpop.permute.xlu1 %151 }
  0x85   :  { %1600 = vmatmul.msk.f32.gmra.mxu0 %vm179_vm0, %v1851_v29 }
  0x86   :  { %1592 = vmatmul.msk.f32.gmra.mxu3 %vm179_vm0, %v1851_v29  ;;  %1608 = vmatmul.msk.f32.gmra.mxu1 %vm179_vm0, %v1851_v29 }
  0x87   :  { %1616 = vmatmul.msk.f32.gmra.mxu2 %vm179_vm0, %v1851_v29 }
  0x89   :  { %v2020_v11 = vpop.permute.xlu0 %146 }
  0x8a   :  { %v221_v14 = vpop.f32.mrf.mxu0 }
  0x8b   :  { %v222_v19 = vadd.f32 %v221_v14, %v2008_v5  ;;  %v262_v20 = vpop.f32.mrf.mxu1 }
  0x8c   :  { %v263_v21 = vadd.f32 %v262_v20, %v2008_v5  ;;  %v2024_v22 = vpop.permute.xlu1 %156 }
  0x8d   :  { %v1147_v23 = vmax.f32 %v222_v19, 0.0  ;;  %1601 = vmatmul.msk.f32.gmra.mxu0 %vm179_vm0, %v1875_v35 }
  0x8e   :  { %1593 = vmatmul.msk.f32.gmra.mxu3 %vm179_vm0, %v1875_v35  ;;  %v1148_v24 = vmax.f32 %v263_v21, 0.0  ;;  %1609 = vmatmul.msk.f32.gmra.mxu1 %vm179_vm0, %v1875_v35  ;;  %v116_v21 = vmax.f32 %v70_v17, 0.0 }
  0x8f   :  { %1331 = vst [vmem:[#allocation5] sm:$0xff] %v1147_v23  ;;  %1617 = vmatmul.msk.f32.gmra.mxu2 %vm179_vm0, %v1875_v35  ;;  %v117_v23 = vmax.f32 %v71_v18, 0.0 }
  0x90   :  { %1332 = vst [vmem:[#allocation5 + $0x8] sm:$0xff] %v1148_v24  ;;  %v239_v25 = vpop.f32.mrf.mxu3  ;;  %874 = vmatpush.msra.mxu0 %v116_v21 }
  0x91   :  { %915 = vmatpush.msra.mxu1 %v117_v23 }
  0x92   :  { %v2034_v26 = vpop.permute.xlu0 %171  ;;  %v303_v28 = vpop.f32.mrf.mxu2 }
  0x93   :  { %v240_v27 = vadd.f32 %v239_v25, %v2034_v26  ;;  %v224_v31 = vpop.f32.mrf.mxu0  ;;  %v304_v32 = vadd.f32 %v303_v28, %v2008_v5  ;;  %v265_v34 = vpop.f32.mrf.mxu1 }
  0x94   :  { %v225_v33 = vadd.f32 %v224_v31, %v2020_v11  ;;  %v266_v37 = vadd.f32 %v265_v34, %v2020_v11  ;;  %v2046_v41 = vpop.permute.xlu1 %176 }
  0x95   :  { %v1285_v36 = vmax.f32 %v240_v27, 0.0  ;;  %v1149_v38 = vmax.f32 %v304_v32, 0.0  ;;  %1602 = vmatmul.msk.f32.gmra.mxu0 %vm179_vm0, %v1894_v46 }
  0x96   :  { %v1170_v39 = vmax.f32 %v225_v33, 0.0  ;;  %1594 = vmatmul.msk.f32.gmra.mxu3 %vm179_vm0, %v1894_v46  ;;  %v1171_v40 = vmax.f32 %v266_v37, 0.0  ;;  %1610 = vmatmul.msk.f32.gmra.mxu1 %vm179_vm0, %v1894_v46  ;;  %v2088_v37 = vpop.permute.xlu2 %166 }
  0x97   :  { %1470 = vst [vmem:[#allocation5 + $0x450] sm:$0xff] %v1285_v36  ;;  %1618 = vmatmul.msk.f32.gmra.mxu2 %vm179_vm0, %v1894_v46 }
  0x98   :  { %1333 = vst [vmem:[#allocation5 + $0x10] sm:$0xff] %v1149_v38 }
  0x99   :  { %1355 = vst [vmem:[#allocation5 + $0xb8] sm:$0xff] %v1170_v39  ;;  %v242_v42 = vpop.f32.mrf.mxu3 }
  0x9a   :  { %1356 = vst [vmem:[#allocation5 + $0xc0] sm:$0xff] %v1171_v40  ;;  %v243_v43 = vadd.f32 %v242_v42, %v2046_v41  ;;  %v306_v44 = vpop.f32.mrf.mxu2 }
  0x9b   :  { %v227_v45 = vpop.f32.mrf.mxu0  ;;  %v307_v49 = vadd.f32 %v306_v44, %v2020_v11  ;;  %v268_v52 = vpop.f32.mrf.mxu1 }
  0x9c   :  { %v1308_v47 = vmax.f32 %v243_v43, 0.0  ;;  %v228_v51 = vadd.f32 %v227_v45, %v2010_v10  ;;  %v269_v53 = vadd.f32 %v268_v52, %v2010_v10 }
  0x9d   :  { %v1172_v54 = vmax.f32 %v307_v49, 0.0  ;;  %1603 = vmatmul.msk.f32.gmra.mxu0 %vm179_vm0, %v1907_v48 }
  0x9e   :  { %1493 = vst [vmem:[#allocation5 + $0x508] sm:$0xff] %v1308_v47  ;;  %v1193_v55 = vmax.f32 %v228_v51, 0.0  ;;  %1595 = vmatmul.msk.f32.gmra.mxu3 %vm179_vm0, %v1907_v48  ;;  %v1194_v56 = vmax.f32 %v269_v53, 0.0  ;;  %1611 = vmatmul.msk.f32.gmra.mxu1 %vm179_vm0, %v1907_v48 }
  0x9f   :  { %1357 = vst [vmem:[#allocation5 + $0xc8] sm:$0xff] %v1172_v54  ;;  %1619 = vmatmul.msk.f32.gmra.mxu2 %vm179_vm0, %v1907_v48 }
  0xa0   :  { %1378 = vst [vmem:[#allocation5 + $0x170] sm:$0xff] %v1193_v55 }
  0xa1   :  { %v280_v57 = vpop.f32.mrf.mxu3  ;;  %1379 = vst [vmem:[#allocation5 + $0x178] sm:$0xff] %v1194_v56 }
  0xa2   :  { %v281_v58 = vadd.f32 %v280_v57, %v2034_v26  ;;  %v309_v61 = vpop.f32.mrf.mxu2 }
  0xa3   :  { %v230_v62 = vpop.f32.mrf.mxu0  ;;  %v310_v2 = vadd.f32 %v309_v61, %v2010_v10  ;;  %v271_v4 = vpop.f32.mrf.mxu1 }
  0xa4   :  { %v1286_v1 = vmax.f32 %v281_v58, 0.0  ;;  %v231_v3 = vadd.f32 %v230_v62, %v2024_v22  ;;  %v272_v6 = vadd.f32 %v271_v4, %v2024_v22  ;;  %v49_v4 = vld [vmem:[#allocation2 + $0x90] sm:$0xff] }
  0xa5   :  { %v1195_v7 = vmax.f32 %v310_v2, 0.0  ;;  %1604 = vmatmul.msk.f32.gmra.mxu0 %vm179_vm0, %v1920_v50 }
  0xa6   :  { %1471 = vst [vmem:[#allocation5 + $0x458] sm:$0xff] %v1286_v1  ;;  %v1216_v8 = vmax.f32 %v231_v3, 0.0  ;;  %1596 = vmatmul.msk.f32.gmra.mxu3 %vm179_vm0, %v1920_v50  ;;  %v1217_v9 = vmax.f32 %v272_v6, 0.0  ;;  %1612 = vmatmul.msk.f32.gmra.mxu1 %vm179_vm0, %v1920_v50  ;;  %v46_v3 = vld [vmem:[#allocation2 + $0x78] sm:$0xff] }
  0xa7   :  { %1380 = vst [vmem:[#allocation5 + $0x180] sm:$0xff] %v1195_v7  ;;  %1620 = vmatmul.msk.f32.gmra.mxu2 %vm179_vm0, %v1920_v50 }
  0xa8   :  { %1401 = vst [vmem:[#allocation5 + $0x228] sm:$0xff] %v1216_v8  ;;  %v92_v8 = vmax.f32 %v46_v3, 0.0 }
  0xa9   :  { %v283_v13 = vpop.f32.mrf.mxu3  ;;  %1402 = vst [vmem:[#allocation5 + $0x230] sm:$0xff] %v1217_v9  ;;  %v95_v9 = vmax.f32 %v49_v4, 0.0 }
  0xaa   :  { %v284_v14 = vadd.f32 %v283_v13, %v2046_v41  ;;  %v312_v19 = vpop.f32.mrf.mxu2  ;;  %834 = vmatpush.msra.mxu3 %v92_v8 }
  0xab   :  { %v233_v20 = vpop.f32.mrf.mxu0  ;;  %v313_v25 = vadd.f32 %v312_v19, %v2024_v22  ;;  %v274_v27 = vpop.f32.mrf.mxu1  ;;  %957 = vmatpush.msra.mxu2 %v95_v9 }
  0xac   :  { %v1309_v24 = vmax.f32 %v284_v14, 0.0  ;;  %v234_v28 = vadd.f32 %v233_v20, %v2072_v12  ;;  %v275_v31 = vadd.f32 %v274_v27, %v2072_v12  ;;  %v47_v27 = vld [vmem:[#allocation2 + $0x80] sm:$0xff] }
  0xad   :  { %v1218_v32 = vmax.f32 %v313_v25, 0.0  ;;  %1605 = vmatmul.msk.f32.gmra.mxu0 %vm179_vm0, %v1832_v16 }
  0xae   :  { %1494 = vst [vmem:[#allocation5 + $0x510] sm:$0xff] %v1309_v24  ;;  %1597 = vmatmul.msk.f32.gmra.mxu3 %vm179_vm0, %v1832_v16  ;;  %v1239_v33 = vmax.f32 %v234_v28, 0.0  ;;  %1613 = vmatmul.msk.f32.gmra.mxu1 %vm179_vm0, %v1832_v16  ;;  %v1240_v34 = vmax.f32 %v275_v31, 0.0  ;;  %v48_v28 = vld [vmem:[#allocation2 + $0x88] sm:$0xff] }
  0xaf   :  { %1403 = vst [vmem:[#allocation5 + $0x238] sm:$0xff] %v1218_v32  ;;  %1621 = vmatmul.msk.f32.gmra.mxu2 %vm179_vm0, %v1832_v16 }
  0xb0   :  { %1424 = vst [vmem:[#allocation5 + $0x2e0] sm:$0xff] %v1239_v33  ;;  %v93_v33 = vmax.f32 %v47_v27, 0.0 }
  0xb1   :  { %v321_v36 = vpop.f32.mrf.mxu3  ;;  %1425 = vst [vmem:[#allocation5 + $0x2e8] sm:$0xff] %v1240_v34  ;;  %v94_v34 = vmax.f32 %v48_v28, 0.0 }
  0xb2   :  { %v322_v38 = vadd.f32 %v321_v36, %v2034_v26  ;;  %v315_v39 = vpop.f32.mrf.mxu2  ;;  %875 = vmatpush.msra.mxu0 %v93_v33 }
  0xb3   :  { %v236_v40 = vpop.f32.mrf.mxu0  ;;  %v316_v42 = vadd.f32 %v315_v39, %v2072_v12  ;;  %v277_v44 = vpop.f32.mrf.mxu1  ;;  %916 = vmatpush.msra.mxu1 %v94_v34 }
  0xb4   :  { %v1287_v43 = vmax.f32 %v322_v38, 0.0  ;;  %v237_v45 = vadd.f32 %v236_v40, %v2088_v37  ;;  %v278_v47 = vadd.f32 %v277_v44, %v2088_v37 }
  0xb5   :  { %v1241_v49 = vmax.f32 %v316_v42, 0.0  ;;  %1606 = vmatmul.msk.f32.gmra.mxu0 %vm179_vm0, %v1856_v30 }
  0xb6   :  { %1472 = vst [vmem:[#allocation5 + $0x460] sm:$0xff] %v1287_v43  ;;  %1598 = vmatmul.msk.f32.gmra.mxu3 %vm179_vm0, %v1856_v30  ;;  %v1262_v51 = vmax.f32 %v237_v45, 0.0  ;;  %1614 = vmatmul.msk.f32.gmra.mxu1 %vm179_vm0, %v1856_v30  ;;  %v1263_v52 = vmax.f32 %v278_v47, 0.0 }
  0xb7   :  { %1426 = vst [vmem:[#allocation5 + $0x2f0] sm:$0xff] %v1241_v49  ;;  %1622 = vmatmul.msk.f32.gmra.mxu2 %vm179_vm0, %v1856_v30 }
  0xb8   :  { %1447 = vst [vmem:[#allocation5 + $0x398] sm:$0xff] %v1262_v51 }
  0xb9   :  { %v324_v53 = vpop.f32.mrf.mxu3  ;;  %1448 = vst [vmem:[#allocation5 + $0x3a0] sm:$0xff] %v1263_v52 }
  0xba   :  { %v325_v54 = vadd.f32 %v324_v53, %v2046_v41  ;;  %v318_v55 = vpop.f32.mrf.mxu2 }
  0xbb   :  { %v385_v56 = vpop.f32.mrf.mxu0  ;;  %v319_v57 = vadd.f32 %v318_v55, %v2088_v37  ;;  %v426_v60 = vpop.f32.mrf.mxu1 }
  0xbc   :  { %v1310_v58 = vmax.f32 %v325_v54, 0.0  ;;  %v386_v59 = vadd.f32 %v385_v56, %v2008_v5  ;;  %v427_v61 = vadd.f32 %v426_v60, %v2008_v5 }
  0xbd   :  { %v1264_v62 = vmax.f32 %v319_v57, 0.0  ;;  %1631 = vmatmul.msk.f32.vlgmr.msrb.gmra.mxu0 %vm179_vm0, %v1827_v15 }
  0xbe   :  { %1495 = vst [vmem:[#allocation5 + $0x518] sm:$0xff] %v1310_v58  ;;  %v1151_v63 = vmax.f32 %v386_v59, 0.0  ;;  %1623 = vmatmul.msk.f32.vlgmr.msrb.gmra.mxu3 %vm179_vm0, %v1827_v15  ;;  %v1152_v0 = vmax.f32 %v427_v61, 0.0  ;;  %1639 = vmatmul.msk.f32.vlgmr.msrb.gmra.mxu1 %vm179_vm0, %v1827_v15 }
  0xbf   :  { %1449 = vst [vmem:[#allocation5 + $0x3a8] sm:$0xff] %v1264_v62  ;;  %1647 = vmatmul.msk.f32.vlgmr.msrb.gmra.mxu2 %vm179_vm0, %v1827_v15 }
  0xc0   :  { %1335 = vst [vmem:[#allocation5 + $0x20] sm:$0xff] %v1151_v63 }
  0xc1   :  { %v344_v1 = vpop.f32.mrf.mxu3  ;;  %1336 = vst [vmem:[#allocation5 + $0x28] sm:$0xff] %v1152_v0 }
  0xc2   :  { %v345_v2 = vadd.f32 %v344_v1, %v2008_v5  ;;  %v467_v6 = vpop.f32.mrf.mxu2 }
  0xc3   :  { %v388_v7 = vpop.f32.mrf.mxu0  ;;  %v468_v14 = vadd.f32 %v467_v6, %v2008_v5  ;;  %v429_v18 = vpop.f32.mrf.mxu1 }
  0xc4   :  { %v1150_v13 = vmax.f32 %v345_v2, 0.0  ;;  %v389_v17 = vadd.f32 %v388_v7, %v2020_v11  ;;  %v430_v19 = vadd.f32 %v429_v18, %v2020_v11  ;;  %v76_v18 = vld [vmem:[#allocation2 + $0x168] sm:$0xff] }
  0xc5   :  { %v1153_v20 = vmax.f32 %v468_v14, 0.0  ;;  %1632 = vmatmul.msk.f32.gmra.mxu0 %vm179_vm0, %v1851_v29 }
  0xc6   :  { %1334 = vst [vmem:[#allocation5 + $0x18] sm:$0xff] %v1150_v13  ;;  %v1174_v21 = vmax.f32 %v389_v17, 0.0  ;;  %1624 = vmatmul.msk.f32.gmra.mxu3 %vm179_vm0, %v1851_v29  ;;  %v1175_v23 = vmax.f32 %v430_v19, 0.0  ;;  %1640 = vmatmul.msk.f32.gmra.mxu1 %vm179_vm0, %v1851_v29  ;;  %v73_v17 = vld [vmem:[#allocation2 + $0x150] sm:$0xff] }
  0xc7   :  { %1337 = vst [vmem:[#allocation5 + $0x30] sm:$0xff] %v1153_v20  ;;  %1648 = vmatmul.msk.f32.gmra.mxu2 %vm179_vm0, %v1851_v29 }
  0xc8   :  { %1359 = vst [vmem:[#allocation5 + $0xd8] sm:$0xff] %v1174_v21  ;;  %v119_v21 = vmax.f32 %v73_v17, 0.0 }
  0xc9   :  { %v347_v24 = vpop.f32.mrf.mxu3  ;;  %1360 = vst [vmem:[#allocation5 + $0xe0] sm:$0xff] %v1175_v23  ;;  %v122_v23 = vmax.f32 %v76_v18, 0.0 }
  0xca   :  { %v348_v25 = vadd.f32 %v347_v24, %v2020_v11  ;;  %v470_v31 = vpop.f32.mrf.mxu2  ;;  %997 = vmatpush.msrb.mxu3 %v119_v21  ;;  %v50_v21 = vld [vmem:[#allocation2 + $0x98] sm:$0xff] }
  0xcb   :  { %v391_v32 = vpop.f32.mrf.mxu0  ;;  %v471_v38 = vadd.f32 %v470_v31, %v2020_v11  ;;  %v432_v40 = vpop.f32.mrf.mxu1  ;;  %1120 = vmatpush.msrb.mxu2 %v122_v23  ;;  %v53_v23 = vld [vmem:[#allocation2 + $0xb0] sm:$0xff] }
  0xcc   :  { %v1173_v36 = vmax.f32 %v348_v25, 0.0  ;;  %v392_v39 = vadd.f32 %v391_v32, %v2010_v10  ;;  %v433_v42 = vadd.f32 %v432_v40, %v2010_v10 }
  0xcd   :  { %v1176_v43 = vmax.f32 %v471_v38, 0.0  ;;  %1633 = vmatmul.msk.f32.gmra.mxu0 %vm179_vm0, %v1875_v35  ;;  %v74_v38 = vld [vmem:[#allocation2 + $0x158] sm:$0xff] }
  0xce   :  { %1358 = vst [vmem:[#allocation5 + $0xd0] sm:$0xff] %v1173_v36  ;;  %v1197_v44 = vmax.f32 %v392_v39, 0.0  ;;  %1625 = vmatmul.msk.f32.gmra.mxu3 %vm179_vm0, %v1875_v35  ;;  %v1198_v45 = vmax.f32 %v433_v42, 0.0  ;;  %1641 = vmatmul.msk.f32.gmra.mxu1 %vm179_vm0, %v1875_v35  ;;  %v75_v39 = vld [vmem:[#allocation2 + $0x160] sm:$0xff] }
  0xcf   :  { %1361 = vst [vmem:[#allocation5 + $0xe8] sm:$0xff] %v1176_v43  ;;  %1649 = vmatmul.msk.f32.gmra.mxu2 %vm179_vm0, %v1875_v35  ;;  %v120_v43 = vmax.f32 %v74_v38, 0.0 }
  0xd0   :  { %1382 = vst [vmem:[#allocation5 + $0x190] sm:$0xff] %v1197_v44  ;;  %v121_v44 = vmax.f32 %v75_v39, 0.0 }
  0xd1   :  { %v350_v47 = vpop.f32.mrf.mxu3  ;;  %1383 = vst [vmem:[#allocation5 + $0x198] sm:$0xff] %v1198_v45  ;;  %1038 = vmatpush.msrb.mxu0 %v120_v43  ;;  %v52_v43 = vld [vmem:[#allocation2 + $0xa8] sm:$0xff] }
  0xd2   :  { %v351_v49 = vadd.f32 %v350_v47, %v2010_v10  ;;  %v473_v51 = vpop.f32.mrf.mxu2  ;;  %1079 = vmatpush.msrb.mxu1 %v121_v44 }
  0xd3   :  { %v394_v52 = vpop.f32.mrf.mxu0  ;;  %v474_v54 = vadd.f32 %v473_v51, %v2010_v10  ;;  %v435_v56 = vpop.f32.mrf.mxu1 }
  0xd4   :  { %v1196_v53 = vmax.f32 %v351_v49, 0.0  ;;  %v395_v55 = vadd.f32 %v394_v52, %v2024_v22  ;;  %v436_v57 = vadd.f32 %v435_v56, %v2024_v22 }
  0xd5   :  { %v1199_v58 = vmax.f32 %v474_v54, 0.0  ;;  %1634 = vmatmul.msk.f32.gmra.mxu0 %vm179_vm0, %v1894_v46 }
  0xd6   :  { %1381 = vst [vmem:[#allocation5 + $0x188] sm:$0xff] %v1196_v53  ;;  %v1220_v59 = vmax.f32 %v395_v55, 0.0  ;;  %1626 = vmatmul.msk.f32.gmra.mxu3 %vm179_vm0, %v1894_v46  ;;  %v1221_v60 = vmax.f32 %v436_v57, 0.0  ;;  %1642 = vmatmul.msk.f32.gmra.mxu1 %vm179_vm0, %v1894_v46 }
  0xd7   :  { %1384 = vst [vmem:[#allocation5 + $0x1a0] sm:$0xff] %v1199_v58  ;;  %1650 = vmatmul.msk.f32.gmra.mxu2 %vm179_vm0, %v1894_v46 }
  0xd8   :  { %1405 = vst [vmem:[#allocation5 + $0x248] sm:$0xff] %v1220_v59 }
  0xd9   :  { %v353_v61 = vpop.f32.mrf.mxu3  ;;  %1406 = vst [vmem:[#allocation5 + $0x250] sm:$0xff] %v1221_v60 }
  0xda   :  { %v354_v62 = vadd.f32 %v353_v61, %v2024_v22  ;;  %v476_v63 = vpop.f32.mrf.mxu2 }
  0xdb   :  { %v397_v0 = vpop.f32.mrf.mxu0  ;;  %v477_v2 = vadd.f32 %v476_v63, %v2024_v22  ;;  %v438_v4 = vpop.f32.mrf.mxu1 }
  0xdc   :  { %v1219_v1 = vmax.f32 %v354_v62, 0.0  ;;  %v398_v3 = vadd.f32 %v397_v0, %v2072_v12  ;;  %v439_v6 = vadd.f32 %v438_v4, %v2072_v12 }
  0xdd   :  { %v1222_v7 = vmax.f32 %v477_v2, 0.0  ;;  %1635 = vmatmul.msk.f32.gmra.mxu0 %vm179_vm0, %v1907_v48 }
  0xde   :  { %1404 = vst [vmem:[#allocation5 + $0x240] sm:$0xff] %v1219_v1  ;;  %v1243_v8 = vmax.f32 %v398_v3, 0.0  ;;  %1627 = vmatmul.msk.f32.gmra.mxu3 %vm179_vm0, %v1907_v48  ;;  %v1244_v9 = vmax.f32 %v439_v6, 0.0  ;;  %1643 = vmatmul.msk.f32.gmra.mxu1 %vm179_vm0, %v1907_v48 }
  0xdf   :  { %1407 = vst [vmem:[#allocation5 + $0x258] sm:$0xff] %v1222_v7  ;;  %1651 = vmatmul.msk.f32.gmra.mxu2 %vm179_vm0, %v1907_v48 }
  0xe0   :  { %1428 = vst [vmem:[#allocation5 + $0x300] sm:$0xff] %v1243_v8 }
  0xe1   :  { %v356_v13 = vpop.f32.mrf.mxu3  ;;  %1429 = vst [vmem:[#allocation5 + $0x308] sm:$0xff] %v1244_v9 }
  0xe2   :  { %v357_v14 = vadd.f32 %v356_v13, %v2072_v12  ;;  %v479_v19 = vpop.f32.mrf.mxu2 }
  0xe3   :  { %v400_v20 = vpop.f32.mrf.mxu0  ;;  %v480_v25 = vadd.f32 %v479_v19, %v2072_v12  ;;  %v441_v28 = vpop.f32.mrf.mxu1 }
  0xe4   :  { %v1242_v24 = vmax.f32 %v357_v14, 0.0  ;;  %v401_v27 = vadd.f32 %v400_v20, %v2088_v37  ;;  %v442_v31 = vadd.f32 %v441_v28, %v2088_v37  ;;  %v99_v28 = vmax.f32 %v53_v23, 0.0 }
  0xe5   :  { %v1245_v48 = vmax.f32 %v480_v25, 0.0  ;;  %1636 = vmatmul.msk.f32.gmra.mxu0 %vm179_vm0, %v1920_v50 }
  0xe6   :  { %1427 = vst [vmem:[#allocation5 + $0x2f8] sm:$0xff] %v1242_v24  ;;  %v1266_v32 = vmax.f32 %v401_v27, 0.0  ;;  %1628 = vmatmul.msk.f32.gmra.mxu3 %vm179_vm0, %v1920_v50  ;;  %v1267_v33 = vmax.f32 %v442_v31, 0.0  ;;  %1644 = vmatmul.msk.f32.gmra.mxu1 %vm179_vm0, %v1920_v50  ;;  %v96_v27 = vmax.f32 %v50_v21, 0.0 }
  0xe7   :  { %1430 = vst [vmem:[#allocation5 + $0x310] sm:$0xff] %v1245_v48  ;;  %1652 = vmatmul.msk.f32.gmra.mxu2 %vm179_vm0, %v1920_v50 }
  0xe8   :  { %1451 = vst [vmem:[#allocation5 + $0x3b8] sm:$0xff] %v1266_v32  ;;  %998 = vmatpush.msrb.mxu3 %v96_v27  ;;  %1121 = vmatpush.msrb.mxu2 %v99_v28 }
  0xe9   :  { %v359_v34 = vpop.f32.mrf.mxu3  ;;  %1452 = vst [vmem:[#allocation5 + $0x3c0] sm:$0xff] %v1267_v33 }
  0xea   :  { %v360_v36 = vadd.f32 %v359_v34, %v2088_v37  ;;  %v482_v40 = vpop.f32.mrf.mxu2 }
  0xeb   :  { %v403_v42 = vpop.f32.mrf.mxu0  ;;  %v483_v47 = vadd.f32 %v482_v40, %v2088_v37  ;;  %v444_v51 = vpop.f32.mrf.mxu1 }
  0xec   :  { %v1265_v45 = vmax.f32 %v360_v36, 0.0  ;;  %v404_v49 = vadd.f32 %v403_v42, %v2034_v26  ;;  %v445_v52 = vadd.f32 %v444_v51, %v2034_v26  ;;  %v51_v42 = vld [vmem:[#allocation2 + $0xa0] sm:$0xff] }
  0xed   :  { %v1268_v50 = vmax.f32 %v483_v47, 0.0  ;;  %1637 = vmatmul.msk.f32.gmra.mxu0 %vm179_vm0, %v1832_v16  ;;  %v97_v47 = vmax.f32 %v51_v42, 0.0 }
  0xee   :  { %1450 = vst [vmem:[#allocation5 + $0x3b0] sm:$0xff] %v1265_v45  ;;  %v1289_v53 = vmax.f32 %v404_v49, 0.0  ;;  %1629 = vmatmul.msk.f32.gmra.mxu3 %vm179_vm0, %v1832_v16  ;;  %v1290_v54 = vmax.f32 %v445_v52, 0.0  ;;  %1645 = vmatmul.msk.f32.gmra.mxu1 %vm179_vm0, %v1832_v16  ;;  %v98_v49 = vmax.f32 %v52_v43, 0.0 }
  0xef   :  { %1453 = vst [vmem:[#allocation5 + $0x3c8] sm:$0xff] %v1268_v50  ;;  %1653 = vmatmul.msk.f32.gmra.mxu2 %vm179_vm0, %v1832_v16  ;;  %1039 = vmatpush.msrb.mxu0 %v97_v47 }
  0xf0   :  { %1474 = vst [vmem:[#allocation5 + $0x470] sm:$0xff] %v1289_v53  ;;  %1080 = vmatpush.msrb.mxu1 %v98_v49 }
  0xf1   :  { %v362_v55 = vpop.f32.mrf.mxu3  ;;  %1475 = vst [vmem:[#allocation5 + $0x478] sm:$0xff] %v1290_v54 }
  0xf2   :  { %v363_v56 = vadd.f32 %v362_v55, %v2034_v26  ;;  %v485_v57 = vpop.f32.mrf.mxu2 }
  0xf3   :  { %v406_v58 = vpop.f32.mrf.mxu0  ;;  %v486_v60 = vadd.f32 %v485_v57, %v2034_v26  ;;  %v447_v62 = vpop.f32.mrf.mxu1 }
  0xf4   :  { %v1288_v59 = vmax.f32 %v363_v56, 0.0  ;;  %v407_v61 = vadd.f32 %v406_v58, %v2046_v41  ;;  %v448_v63 = vadd.f32 %v447_v62, %v2046_v41 }
  0xf5   :  { %v1291_v0 = vmax.f32 %v486_v60, 0.0  ;;  %1638 = vmatmul.msk.f32.gmra.mxu0 %vm179_vm0, %v1856_v30 }
  0xf6   :  { %1473 = vst [vmem:[#allocation5 + $0x468] sm:$0xff] %v1288_v59  ;;  %v1312_v1 = vmax.f32 %v407_v61, 0.0  ;;  %1630 = vmatmul.msk.f32.gmra.mxu3 %vm179_vm0, %v1856_v30  ;;  %v1313_v16 = vmax.f32 %v448_v63, 0.0  ;;  %1646 = vmatmul.msk.f32.gmra.mxu1 %vm179_vm0, %v1856_v30 }
  0xf7   :  { %1476 = vst [vmem:[#allocation5 + $0x480] sm:$0xff] %v1291_v0  ;;  %1654 = vmatmul.msk.f32.gmra.mxu2 %vm179_vm0, %v1856_v30 }
  0xf8   :  { %1497 = vst [vmem:[#allocation5 + $0x528] sm:$0xff] %v1312_v1 }
  0xf9   :  { %v365_v2 = vpop.f32.mrf.mxu3  ;;  %1498 = vst [vmem:[#allocation5 + $0x530] sm:$0xff] %v1313_v16 }
  0xfa   :  { %v366_v3 = vadd.f32 %v365_v2, %v2046_v41  ;;  %v488_v4 = vpop.f32.mrf.mxu2 }
  0xfb   :  { %v549_v6 = vpop.f32.mrf.mxu0  ;;  %v489_v8 = vadd.f32 %v488_v4, %v2046_v41  ;;  %v590_v13 = vpop.f32.mrf.mxu1 }
  0xfc   :  { %v1311_v7 = vmax.f32 %v366_v3, 0.0  ;;  %v550_v9 = vadd.f32 %v549_v6, %v2008_v5  ;;  %v591_v14 = vadd.f32 %v590_v13, %v2008_v5 }
  0xfd   :  { %v1314_v17 = vmax.f32 %v489_v8, 0.0  ;;  %1663 = vmatmul.msk.f32.vlgmr.msra.gmra.mxu0 %vm179_vm0, %v1827_v15 }
  0xfe   :  { %1496 = vst [vmem:[#allocation5 + $0x520] sm:$0xff] %v1311_v7  ;;  %v1155_v18 = vmax.f32 %v550_v9, 0.0  ;;  %1655 = vmatmul.msk.f32.vlgmr.msra.gmra.mxu3 %vm179_vm0, %v1827_v15  ;;  %v1156_v30 = vmax.f32 %v591_v14, 0.0  ;;  %1671 = vmatmul.msk.f32.vlgmr.msra.gmra.mxu1 %vm179_vm0, %v1827_v15 }
  0xff   :  { %1499 = vst [vmem:[#allocation5 + $0x538] sm:$0xff] %v1314_v17  ;;  %1679 = vmatmul.msk.f32.vlgmr.msra.gmra.mxu2 %vm179_vm0, %v1827_v15 }
 0x100   :  { %1339 = vst [vmem:[#allocation5 + $0x40] sm:$0xff] %v1155_v18 }
 0x101   :  { %v508_v19 = vpop.f32.mrf.mxu3  ;;  %1340 = vst [vmem:[#allocation5 + $0x48] sm:$0xff] %v1156_v30 }
 0x102   :  { %v509_v20 = vadd.f32 %v508_v19, %v2008_v5  ;;  %v631_v24 = vpop.f32.mrf.mxu2 }
 0x103   :  { %v552_v25 = vpop.f32.mrf.mxu0  ;;  %v632_v48 = vadd.f32 %v631_v24, %v2008_v5  ;;  %v593_v33 = vpop.f32.mrf.mxu1 }
 0x104   :  { %v1154_v31 = vmax.f32 %v509_v20, 0.0  ;;  %v553_v32 = vadd.f32 %v552_v25, %v2020_v11  ;;  %v594_v34 = vadd.f32 %v593_v33, %v2020_v11 }
 0x105   :  { %v1157_v15 = vmax.f32 %v632_v48, 0.0  ;;  %1664 = vmatmul.msk.f32.gmra.mxu0 %vm179_vm0, %v1851_v29 }
 0x106   :  { %1338 = vst [vmem:[#allocation5 + $0x38] sm:$0xff] %v1154_v31  ;;  %v1178_v36 = vmax.f32 %v553_v32, 0.0  ;;  %1656 = vmatmul.msk.f32.gmra.mxu3 %vm179_vm0, %v1851_v29  ;;  %v1179_v38 = vmax.f32 %v594_v34, 0.0  ;;  %1672 = vmatmul.msk.f32.gmra.mxu1 %vm179_vm0, %v1851_v29  ;;  %v2270_v34 = vld [vmem:[%s2487_s1 + $0x28] sm:$0xff] }
 0x107   :  { %1341 = vst [vmem:[#allocation5 + $0x50] sm:$0xff] %v1157_v15  ;;  %1680 = vmatmul.msk.f32.gmra.mxu2 %vm179_vm0, %v1851_v29 }
 0x108   :  { %1363 = vst [vmem:[#allocation5 + $0xf8] sm:$0xff] %v1178_v36 }
 0x109   :  { %v511_v39 = vpop.f32.mrf.mxu3  ;;  %1364 = vst [vmem:[#allocation5 + $0x100] sm:$0xff] %v1179_v38 }
 0x10a   :  { %v512_v40 = vadd.f32 %v511_v39, %v2020_v11  ;;  %v634_v44 = vpop.f32.mrf.mxu2 }
 0x10b   :  { %v555_v45 = vpop.f32.mrf.mxu0  ;;  %v635_v52 = vadd.f32 %v634_v44, %v2020_v11  ;;  %v596_v53 = vpop.f32.mrf.mxu1 }
 0x10c   :  { %v1177_v51 = vmax.f32 %v512_v40, 0.0  ;;  %v556_v50 = vadd.f32 %v555_v45, %v2010_v10  ;;  %v597_v54 = vadd.f32 %v596_v53, %v2010_v10 }
 0x10d   :  { %v1180_v29 = vmax.f32 %v635_v52, 0.0  ;;  %1665 = vmatmul.msk.f32.gmra.mxu0 %vm179_vm0, %v1875_v35  ;;  %v2287_v52 = vld [vmem:[%s2487_s1 + $0x30] sm:$0xff] }
 0x10e   :  { %1362 = vst [vmem:[#allocation5 + $0xf0] sm:$0xff] %v1177_v51  ;;  %v1201_v55 = vmax.f32 %v556_v50, 0.0  ;;  %1657 = vmatmul.msk.f32.gmra.mxu3 %vm179_vm0, %v1875_v35  ;;  %v1202_v56 = vmax.f32 %v597_v54, 0.0  ;;  %1673 = vmatmul.msk.f32.gmra.mxu1 %vm179_vm0, %v1875_v35 }
 0x10f   :  { %1365 = vst [vmem:[#allocation5 + $0x108] sm:$0xff] %v1180_v29  ;;  %1681 = vmatmul.msk.f32.gmra.mxu2 %vm179_vm0, %v1875_v35 }
 0x110   :  { %1386 = vst [vmem:[#allocation5 + $0x1b0] sm:$0xff] %v1201_v55 }
 0x111   :  { %v514_v57 = vpop.f32.mrf.mxu3  ;;  %1387 = vst [vmem:[#allocation5 + $0x1b8] sm:$0xff] %v1202_v56 }
 0x112   :  { %v515_v58 = vadd.f32 %v514_v57, %v2010_v10  ;;  %v637_v59 = vpop.f32.mrf.mxu2 }
 0x113   :  { %v558_v60 = vpop.f32.mrf.mxu0  ;;  %v638_v62 = vadd.f32 %v637_v59, %v2010_v10  ;;  %v599_v0 = vpop.f32.mrf.mxu1 }
 0x114   :  { %v1200_v61 = vmax.f32 %v515_v58, 0.0  ;;  %v559_v63 = vadd.f32 %v558_v60, %v2024_v22  ;;  %v600_v1 = vadd.f32 %v599_v0, %v2024_v22 }
 0x115   :  { %v1203_v16 = vmax.f32 %v638_v62, 0.0  ;;  %1666 = vmatmul.msk.f32.gmra.mxu0 %vm179_vm0, %v1894_v46 }
 0x116   :  { %1385 = vst [vmem:[#allocation5 + $0x1a8] sm:$0xff] %v1200_v61  ;;  %v1224_v2 = vmax.f32 %v559_v63, 0.0  ;;  %1658 = vmatmul.msk.f32.gmra.mxu3 %vm179_vm0, %v1894_v46  ;;  %v1225_v35 = vmax.f32 %v600_v1, 0.0  ;;  %1674 = vmatmul.msk.f32.gmra.mxu1 %vm179_vm0, %v1894_v46  ;;  %v2304_v63 = vld [vmem:[%s2487_s1 + $0x38] sm:$0xff] }
 0x117   :  { %1388 = vst [vmem:[#allocation5 + $0x1c0] sm:$0xff] %v1203_v16  ;;  %1682 = vmatmul.msk.f32.gmra.mxu2 %vm179_vm0, %v1894_v46  ;;  %v2253_v46 = vld [vmem:[%s2487_s1 + $0x20] sm:$0xff] }
 0x118   :  { %1409 = vst [vmem:[#allocation5 + $0x268] sm:$0xff] %v1224_v2 }
 0x119   :  { %v517_v3 = vpop.f32.mrf.mxu3  ;;  %1410 = vst [vmem:[#allocation5 + $0x270] sm:$0xff] %v1225_v35 }
 0x11a   :  { %v518_v4 = vadd.f32 %v517_v3, %v2024_v22  ;;  %v640_v6 = vpop.f32.mrf.mxu2 }
 0x11b   :  { %v561_v7 = vpop.f32.mrf.mxu0  ;;  %v641_v9 = vadd.f32 %v640_v6, %v2024_v22  ;;  %v602_v14 = vpop.f32.mrf.mxu1 }
 0x11c   :  { %v1223_v8 = vmax.f32 %v518_v4, 0.0  ;;  %v562_v13 = vadd.f32 %v561_v7, %v2072_v12  ;;  %v603_v17 = vadd.f32 %v602_v14, %v2072_v12  ;;  %v1737_v14 = vld [vmem:[%s2487_s1] sm:$0xff] }
 0x11d   :  { %v1226_v18 = vmax.f32 %v641_v9, 0.0  ;;  %1667 = vmatmul.msk.f32.gmra.mxu0 %vm179_vm0, %v2253_v46 }
 0x11e   :  { %1408 = vst [vmem:[#allocation5 + $0x260] sm:$0xff] %v1223_v8  ;;  %v1247_v30 = vmax.f32 %v562_v13, 0.0  ;;  %1659 = vmatmul.msk.f32.gmra.mxu3 %vm179_vm0, %v2253_v46  ;;  %v1248_v19 = vmax.f32 %v603_v17, 0.0  ;;  %1675 = vmatmul.msk.f32.gmra.mxu1 %vm179_vm0, %v2253_v46 }
 0x11f   :  { %1411 = vst [vmem:[#allocation5 + $0x278] sm:$0xff] %v1226_v18  ;;  %1683 = vmatmul.msk.f32.gmra.mxu2 %vm179_vm0, %v2253_v46 }
 0x120   :  { %1432 = vst [vmem:[#allocation5 + $0x320] sm:$0xff] %v1247_v30 }
 0x121   :  { %v520_v20 = vpop.f32.mrf.mxu3  ;;  %1433 = vst [vmem:[#allocation5 + $0x328] sm:$0xff] %v1248_v19 }
 0x122   :  { %v521_v21 = vadd.f32 %v520_v20, %v2072_v12  ;;  %v643_v23 = vpop.f32.mrf.mxu2 }
 0x123   :  { %v564_v24 = vpop.f32.mrf.mxu0  ;;  %v644_v27 = vadd.f32 %v643_v23, %v2072_v12  ;;  %v605_v31 = vpop.f32.mrf.mxu1 }
 0x124   :  { %v1246_v25 = vmax.f32 %v521_v21, 0.0  ;;  %v565_v28 = vadd.f32 %v564_v24, %v2088_v37  ;;  %v606_v48 = vadd.f32 %v605_v31, %v2088_v37 }
 0x125   :  { %v1249_v32 = vmax.f32 %v644_v27, 0.0  ;;  %1668 = vmatmul.msk.f32.gmra.mxu0 %vm179_vm0, %v2270_v34 }
 0x126   :  { %1431 = vst [vmem:[#allocation5 + $0x318] sm:$0xff] %v1246_v25  ;;  %v1270_v33 = vmax.f32 %v565_v28, 0.0  ;;  %1660 = vmatmul.msk.f32.gmra.mxu3 %vm179_vm0, %v2270_v34  ;;  %v1271_v15 = vmax.f32 %v606_v48, 0.0  ;;  %1676 = vmatmul.msk.f32.gmra.mxu1 %vm179_vm0, %v2270_v34  ;;  %v1738_v48 = vld [vmem:[%s2487_s1 + $0x8] sm:$0xff] }
 0x127   :  { %1434 = vst [vmem:[#allocation5 + $0x330] sm:$0xff] %v1249_v32  ;;  %1684 = vmatmul.msk.f32.gmra.mxu2 %vm179_vm0, %v2270_v34 }
 0x128   :  { %1455 = vst [vmem:[#allocation5 + $0x3d8] sm:$0xff] %v1270_v33 }
 0x129   :  { %v523_v36 = vpop.f32.mrf.mxu3  ;;  %1456 = vst [vmem:[#allocation5 + $0x3e0] sm:$0xff] %v1271_v15 }
 0x12a   :  { %v524_v38 = vadd.f32 %v523_v36, %v2088_v37  ;;  %v646_v39 = vpop.f32.mrf.mxu2 }
 0x12b   :  { %v567_v40 = vpop.f32.mrf.mxu0  ;;  %v647_v43 = vadd.f32 %v646_v39, %v2088_v37  ;;  %v608_v45 = vpop.f32.mrf.mxu1 }
 0x12c   :  { %v1269_v42 = vmax.f32 %v524_v38, 0.0  ;;  %v568_v44 = vadd.f32 %v567_v40, %v2034_v26  ;;  %v609_v47 = vadd.f32 %v608_v45, %v2034_v26 }
 0x12d   :  { %v1272_v49 = vmax.f32 %v647_v43, 0.0  ;;  %1669 = vmatmul.msk.f32.gmra.mxu0 %vm179_vm0, %v2287_v52 }
 0x12e   :  { %1454 = vst [vmem:[#allocation5 + $0x3d0] sm:$0xff] %v1269_v42  ;;  %v1293_v51 = vmax.f32 %v568_v44, 0.0  ;;  %1661 = vmatmul.msk.f32.gmra.mxu3 %vm179_vm0, %v2287_v52  ;;  %v1294_v50 = vmax.f32 %v609_v47, 0.0  ;;  %1677 = vmatmul.msk.f32.gmra.mxu1 %vm179_vm0, %v2287_v52 }
 0x12f   :  { %1457 = vst [vmem:[#allocation5 + $0x3e8] sm:$0xff] %v1272_v49  ;;  %1685 = vmatmul.msk.f32.gmra.mxu2 %vm179_vm0, %v2287_v52  ;;  %v1739_v49 = vld [vmem:[%s2487_s1 + $0x10] sm:$0xff] }
 0x130   :  { %1478 = vst [vmem:[#allocation5 + $0x490] sm:$0xff] %v1293_v51 }
 0x131   :  { %v526_v53 = vpop.f32.mrf.mxu3  ;;  %1479 = vst [vmem:[#allocation5 + $0x498] sm:$0xff] %v1294_v50 }
 0x132   :  { %v527_v54 = vadd.f32 %v526_v53, %v2034_v26  ;;  %v649_v29 = vpop.f32.mrf.mxu2 }
 0x133   :  { %v570_v55 = vpop.f32.mrf.mxu0  ;;  %v650_v57 = vadd.f32 %v649_v29, %v2034_v26  ;;  %v611_v59 = vpop.f32.mrf.mxu1 }
 0x134   :  { %v1292_v56 = vmax.f32 %v527_v54, 0.0  ;;  %v571_v58 = vadd.f32 %v570_v55, %v2046_v41  ;;  %v612_v60 = vadd.f32 %v611_v59, %v2046_v41 }
 0x135   :  { %v1295_v61 = vmax.f32 %v650_v57, 0.0  ;;  %1670 = vmatmul.msk.f32.gmra.mxu0 %vm179_vm0, %v2304_v63 }
 0x136   :  { %1477 = vst [vmem:[#allocation5 + $0x488] sm:$0xff] %v1292_v56  ;;  %v1316_v62 = vmax.f32 %v571_v58, 0.0  ;;  %1662 = vmatmul.msk.f32.gmra.mxu3 %vm179_vm0, %v2304_v63  ;;  %v1317_v0 = vmax.f32 %v612_v60, 0.0  ;;  %1678 = vmatmul.msk.f32.gmra.mxu1 %vm179_vm0, %v2304_v63 }
 0x137   :  { %1480 = vst [vmem:[#allocation5 + $0x4a0] sm:$0xff] %v1295_v61  ;;  %1686 = vmatmul.msk.f32.gmra.mxu2 %vm179_vm0, %v2304_v63 }
 0x138   :  { %1501 = vst [vmem:[#allocation5 + $0x548] sm:$0xff] %v1316_v62  ;;  %v1740_v62 = vld [vmem:[%s2487_s1 + $0x18] sm:$0xff]  ;;  %s1797_s1 = smov [#allocation5]  }
 0x139   :  { %v529_v1 = vpop.f32.mrf.mxu3  ;;  %1502 = vst [vmem:[#allocation5 + $0x550] sm:$0xff] %v1317_v0  ;;  %s1520_s12 = sshll.u32 %s1797_s1, 4  ;;  %s1521_s12 = int_to_ptr.vmem [resolvable:$true] %s1520_s12 }
 0x13a   :  { %v530_v16 = vadd.f32 %v529_v1, %v2046_v41  ;;  %v652_v2 = vpop.f32.mrf.mxu2 }
 0x13b   :  { %v713_v35 = vpop.f32.mrf.mxu0  ;;  %v653_v4 = vadd.f32 %v652_v2, %v2046_v41  ;;  %v754_v7 = vpop.f32.mrf.mxu1 }
 0x13c   :  { %v1315_v3 = vmax.f32 %v530_v16, 0.0  ;;  %v714_v6 = vadd.f32 %v713_v35, %v2008_v5  ;;  %v755_v8 = vadd.f32 %v754_v7, %v2008_v5 }
 0x13d   :  { %v1318_v9 = vmax.f32 %v653_v4, 0.0  ;;  %1695 = vmatmul.msk.f32.vlgmr.msrb.gmra.mxu0 %vm179_vm0, %v1737_v14 }
 0x13e   :  { %1500 = vst [vmem:[#allocation5 + $0x540] sm:$0xff] %v1315_v3  ;;  %v1159_v13 = vmax.f32 %v714_v6, 0.0  ;;  %1687 = vmatmul.msk.f32.vlgmr.msrb.gmra.mxu3 %vm179_vm0, %v1737_v14  ;;  %v1160_v17 = vmax.f32 %v755_v8, 0.0  ;;  %1703 = vmatmul.msk.f32.vlgmr.msrb.gmra.mxu1 %vm179_vm0, %v1737_v14 }
 0x13f   :  { %1503 = vst [vmem:[#allocation5 + $0x558] sm:$0xff] %v1318_v9  ;;  %1711 = vmatmul.msk.f32.vlgmr.msrb.gmra.mxu2 %vm179_vm0, %v1737_v14 }
 0x140   :  { %1343 = vst [vmem:[#allocation5 + $0x60] sm:$0xff] %v1159_v13 }
 0x141   :  { %v672_v18 = vpop.f32.mrf.mxu3  ;;  %1344 = vst [vmem:[#allocation5 + $0x68] sm:$0xff] %v1160_v17 }
 0x142   :  { %v673_v30 = vadd.f32 %v672_v18, %v2008_v5  ;;  %v795_v19 = vpop.f32.mrf.mxu2 }
 0x143   :  { %v716_v20 = vpop.f32.mrf.mxu0  ;;  %v796_v23 = vadd.f32 %v795_v19, %v2008_v5  ;;  %v757_v25 = vpop.f32.mrf.mxu1 }
 0x144   :  { %v1158_v21 = vmax.f32 %v673_v30, 0.0  ;;  %v717_v24 = vadd.f32 %v716_v20, %v2020_v11  ;;  %v758_v27 = vadd.f32 %v757_v25, %v2020_v11 }
 0x145   :  { %v1161_v28 = vmax.f32 %v796_v23, 0.0  ;;  %1696 = vmatmul.msk.f32.gmra.mxu0 %vm179_vm0, %v1738_v48 }
 0x146   :  { %1342 = vst [vmem:[#allocation5 + $0x58] sm:$0xff] %v1158_v21  ;;  %v1182_v31 = vmax.f32 %v717_v24, 0.0  ;;  %1688 = vmatmul.msk.f32.gmra.mxu3 %vm179_vm0, %v1738_v48  ;;  %v1183_v32 = vmax.f32 %v758_v27, 0.0  ;;  %1704 = vmatmul.msk.f32.gmra.mxu1 %vm179_vm0, %v1738_v48 }
 0x147   :  { %1345 = vst [vmem:[#allocation5 + $0x70] sm:$0xff] %v1161_v28  ;;  %1712 = vmatmul.msk.f32.gmra.mxu2 %vm179_vm0, %v1738_v48 }
 0x148   :  { %1367 = vst [vmem:[#allocation5 + $0x118] sm:$0xff] %v1182_v31 }
 0x149   :  { %v675_v33 = vpop.f32.mrf.mxu3  ;;  %1368 = vst [vmem:[#allocation5 + $0x120] sm:$0xff] %v1183_v32 }
 0x14a   :  { %v676_v15 = vadd.f32 %v675_v33, %v2020_v11  ;;  %v798_v36 = vpop.f32.mrf.mxu2 }
 0x14b   :  { %v719_v38 = vpop.f32.mrf.mxu0  ;;  %v799_v40 = vadd.f32 %v798_v36, %v2020_v11  ;;  %v760_v43 = vpop.f32.mrf.mxu1 }
 0x14c   :  { %v1181_v39 = vmax.f32 %v676_v15, 0.0  ;;  %v720_v42 = vadd.f32 %v719_v38, %v2010_v10  ;;  %v761_v44 = vadd.f32 %v760_v43, %v2010_v10 }
 0x14d   :  { %v1184_v45 = vmax.f32 %v799_v40, 0.0  ;;  %1697 = vmatmul.msk.f32.gmra.mxu0 %vm179_vm0, %v1739_v49 }
 0x14e   :  { %1366 = vst [vmem:[#allocation5 + $0x110] sm:$0xff] %v1181_v39  ;;  %v1205_v47 = vmax.f32 %v720_v42, 0.0  ;;  %1689 = vmatmul.msk.f32.gmra.mxu3 %vm179_vm0, %v1739_v49  ;;  %v1206_v51 = vmax.f32 %v761_v44, 0.0  ;;  %1705 = vmatmul.msk.f32.gmra.mxu1 %vm179_vm0, %v1739_v49 }
 0x14f   :  { %1369 = vst [vmem:[#allocation5 + $0x128] sm:$0xff] %v1184_v45  ;;  %1713 = vmatmul.msk.f32.gmra.mxu2 %vm179_vm0, %v1739_v49 }
 0x150   :  { %1390 = vst [vmem:[#allocation5 + $0x1d0] sm:$0xff] %v1205_v47 }
 0x151   :  { %v678_v50 = vpop.f32.mrf.mxu3  ;;  %1391 = vst [vmem:[#allocation5 + $0x1d8] sm:$0xff] %v1206_v51 }
 0x152   :  { %v679_v53 = vadd.f32 %v678_v50, %v2010_v10  ;;  %v801_v54 = vpop.f32.mrf.mxu2 }
 0x153   :  { %v722_v29 = vpop.f32.mrf.mxu0  ;;  %v802_v56 = vadd.f32 %v801_v54, %v2010_v10  ;;  %v763_v58 = vpop.f32.mrf.mxu1 }
 0x154   :  { %v1204_v55 = vmax.f32 %v679_v53, 0.0  ;;  %v723_v57 = vadd.f32 %v722_v29, %v2024_v22  ;;  %v764_v59 = vadd.f32 %v763_v58, %v2024_v22 }
 0x155   :  { %v1207_v60 = vmax.f32 %v802_v56, 0.0  ;;  %1698 = vmatmul.msk.f32.gmra.mxu0 %vm179_vm0, %v1740_v62 }
 0x156   :  { %1389 = vst [vmem:[#allocation5 + $0x1c8] sm:$0xff] %v1204_v55  ;;  %v1228_v61 = vmax.f32 %v723_v57, 0.0  ;;  %1690 = vmatmul.msk.f32.gmra.mxu3 %vm179_vm0, %v1740_v62  ;;  %v1229_v0 = vmax.f32 %v764_v59, 0.0  ;;  %1706 = vmatmul.msk.f32.gmra.mxu1 %vm179_vm0, %v1740_v62 }
 0x157   :  { %1392 = vst [vmem:[#allocation5 + $0x1e0] sm:$0xff] %v1207_v60  ;;  %1714 = vmatmul.msk.f32.gmra.mxu2 %vm179_vm0, %v1740_v62 }
 0x158   :  { %1413 = vst [vmem:[#allocation5 + $0x288] sm:$0xff] %v1228_v61 }
 0x159   :  { %v681_v1 = vpop.f32.mrf.mxu3  ;;  %1414 = vst [vmem:[#allocation5 + $0x290] sm:$0xff] %v1229_v0 }
 0x15a   :  { %v682_v16 = vadd.f32 %v681_v1, %v2024_v22  ;;  %v804_v2 = vpop.f32.mrf.mxu2 }
 0x15b   :  { %v725_v35 = vpop.f32.mrf.mxu0  ;;  %v805_v4 = vadd.f32 %v804_v2, %v2024_v22  ;;  %v766_v7 = vpop.f32.mrf.mxu1 }
 0x15c   :  { %v1227_v3 = vmax.f32 %v682_v16, 0.0  ;;  %v726_v6 = vadd.f32 %v725_v35, %v2072_v12  ;;  %v767_v8 = vadd.f32 %v766_v7, %v2072_v12 }
 0x15d   :  { %v1230_v9 = vmax.f32 %v805_v4, 0.0  ;;  %1699 = vmatmul.msk.f32.gmra.mxu0 %vm179_vm0, %v2253_v46 }
 0x15e   :  { %1412 = vst [vmem:[#allocation5 + $0x280] sm:$0xff] %v1227_v3  ;;  %v1251_v13 = vmax.f32 %v726_v6, 0.0  ;;  %1691 = vmatmul.msk.f32.gmra.mxu3 %vm179_vm0, %v2253_v46  ;;  %v1252_v14 = vmax.f32 %v767_v8, 0.0  ;;  %1707 = vmatmul.msk.f32.gmra.mxu1 %vm179_vm0, %v2253_v46 }
 0x15f   :  { %1415 = vst [vmem:[#allocation5 + $0x298] sm:$0xff] %v1230_v9  ;;  %1715 = vmatmul.msk.f32.gmra.mxu2 %vm179_vm0, %v2253_v46 }
 0x160   :  { %1436 = vst [vmem:[#allocation5 + $0x340] sm:$0xff] %v1251_v13 }
 0x161   :  { %v684_v17 = vpop.f32.mrf.mxu3  ;;  %1437 = vst [vmem:[#allocation5 + $0x348] sm:$0xff] %v1252_v14 }
 0x162   :  { %v685_v18 = vadd.f32 %v684_v17, %v2072_v12  ;;  %v807_v30 = vpop.f32.mrf.mxu2 }
 0x163   :  { %v728_v19 = vpop.f32.mrf.mxu0  ;;  %v808_v21 = vadd.f32 %v807_v30, %v2072_v12  ;;  %v769_v24 = vpop.f32.mrf.mxu1 }
 0x164   :  { %v1250_v20 = vmax.f32 %v685_v18, 0.0  ;;  %v729_v23 = vadd.f32 %v728_v19, %v2088_v37  ;;  %v770_v25 = vadd.f32 %v769_v24, %v2088_v37 }
 0x165   :  { %v1253_v27 = vmax.f32 %v808_v21, 0.0  ;;  %1700 = vmatmul.msk.f32.gmra.mxu0 %vm179_vm0, %v2270_v34 }
 0x166   :  { %1435 = vst [vmem:[#allocation5 + $0x338] sm:$0xff] %v1250_v20  ;;  %v1274_v28 = vmax.f32 %v729_v23, 0.0  ;;  %1692 = vmatmul.msk.f32.gmra.mxu3 %vm179_vm0, %v2270_v34  ;;  %v1275_v46 = vmax.f32 %v770_v25, 0.0  ;;  %1708 = vmatmul.msk.f32.gmra.mxu1 %vm179_vm0, %v2270_v34 }
 0x167   :  { %1438 = vst [vmem:[#allocation5 + $0x350] sm:$0xff] %v1253_v27  ;;  %1716 = vmatmul.msk.f32.gmra.mxu2 %vm179_vm0, %v2270_v34 }
 0x168   :  { %1459 = vst [vmem:[#allocation5 + $0x3f8] sm:$0xff] %v1274_v28 }
 0x169   :  { %v687_v31 = vpop.f32.mrf.mxu3  ;;  %1460 = vst [vmem:[#allocation5 + $0x400] sm:$0xff] %v1275_v46 }
 0x16a   :  { %v688_v48 = vadd.f32 %v687_v31, %v2088_v37  ;;  %v810_v32 = vpop.f32.mrf.mxu2 }
 0x16b   :  { %v731_v33 = vpop.f32.mrf.mxu0  ;;  %v811_v36 = vadd.f32 %v810_v32, %v2088_v37  ;;  %v772_v39 = vpop.f32.mrf.mxu1 }
 0x16c   :  { %v1273_v15 = vmax.f32 %v688_v48, 0.0  ;;  %v732_v38 = vadd.f32 %v731_v33, %v2034_v26  ;;  %v773_v40 = vadd.f32 %v772_v39, %v2034_v26 }
 0x16d   :  { %v1276_v42 = vmax.f32 %v811_v36, 0.0  ;;  %1701 = vmatmul.msk.f32.gmra.mxu0 %vm179_vm0, %v2287_v52 }
 0x16e   :  { %1458 = vst [vmem:[#allocation5 + $0x3f0] sm:$0xff] %v1273_v15  ;;  %v1297_v43 = vmax.f32 %v732_v38, 0.0  ;;  %1693 = vmatmul.msk.f32.gmra.mxu3 %vm179_vm0, %v2287_v52  ;;  %v1298_v34 = vmax.f32 %v773_v40, 0.0  ;;  %1709 = vmatmul.msk.f32.gmra.mxu1 %vm179_vm0, %v2287_v52 }
 0x16f   :  { %1461 = vst [vmem:[#allocation5 + $0x408] sm:$0xff] %v1276_v42  ;;  %1717 = vmatmul.msk.f32.gmra.mxu2 %vm179_vm0, %v2287_v52 }
 0x170   :  { %1482 = vst [vmem:[#allocation5 + $0x4b0] sm:$0xff] %v1297_v43 }
 0x171   :  { %v690_v44 = vpop.f32.mrf.mxu3  ;;  %1483 = vst [vmem:[#allocation5 + $0x4b8] sm:$0xff] %v1298_v34 }
 0x172   :  { %v691_v45 = vadd.f32 %v690_v44, %v2034_v26  ;;  %v813_v47 = vpop.f32.mrf.mxu2 }
 0x173   :  { %v734_v49 = vpop.f32.mrf.mxu0  ;;  %v814_v50 = vadd.f32 %v813_v47, %v2034_v26  ;;  %v775_v54 = vpop.f32.mrf.mxu1 }
 0x174   :  { %v1296_v51 = vmax.f32 %v691_v45, 0.0  ;;  %v735_v53 = vadd.f32 %v734_v49, %v2046_v41  ;;  %v776_v29 = vadd.f32 %v775_v54, %v2046_v41 }
 0x175   :  { %v1299_v55 = vmax.f32 %v814_v50, 0.0  ;;  %1702 = vmatmul.msk.f32.gmra.mxu0 %vm179_vm0, %v2304_v63 }
 0x176   :  { %1481 = vst [vmem:[#allocation5 + $0x4a8] sm:$0xff] %v1296_v51  ;;  %v1320_v56 = vmax.f32 %v735_v53, 0.0  ;;  %1694 = vmatmul.msk.f32.gmra.mxu3 %vm179_vm0, %v2304_v63  ;;  %v1321_v52 = vmax.f32 %v776_v29, 0.0  ;;  %1710 = vmatmul.msk.f32.gmra.mxu1 %vm179_vm0, %v2304_v63 }
 0x177   :  { %1484 = vst [vmem:[#allocation5 + $0x4c0] sm:$0xff] %v1299_v55  ;;  %1718 = vmatmul.msk.f32.gmra.mxu2 %vm179_vm0, %v2304_v63 }
 0x178   :  { %1505 = vst [vmem:[#allocation5 + $0x568] sm:$0xff] %v1320_v56 }
 0x179   :  { %v693_v57 = vpop.f32.mrf.mxu3  ;;  %1506 = vst [vmem:[#allocation5 + $0x570] sm:$0xff] %v1321_v52 }
 0x17a   :  { %v694_v58 = vadd.f32 %v693_v57, %v2046_v41  ;;  %v816_v59 = vpop.f32.mrf.mxu2 }
 0x17b   :  { %v877_v60 = vpop.f32.mrf.mxu0  ;;  %v817_v62 = vadd.f32 %v816_v59, %v2046_v41  ;;  %v918_v1 = vpop.f32.mrf.mxu1 }
 0x17c   :  { %v1319_v61 = vmax.f32 %v694_v58, 0.0  ;;  %v878_v0 = vadd.f32 %v877_v60, %v2008_v5  ;;  %v919_v16 = vadd.f32 %v918_v1, %v2008_v5 }
 0x17d   :  { %v1322_v2 = vmax.f32 %v817_v62, 0.0 }
 0x17e   :  { %1504 = vst [vmem:[#allocation5 + $0x560] sm:$0xff] %v1319_v61  ;;  %v1163_v35 = vmax.f32 %v878_v0, 0.0  ;;  %v1164_v3 = vmax.f32 %v919_v16, 0.0 }
 0x17f   :  { %1507 = vst [vmem:[#allocation5 + $0x578] sm:$0xff] %v1322_v2 }
 0x180   :  { %1347 = vst [vmem:[#allocation5 + $0x80] sm:$0xff] %v1163_v35 }
 0x181   :  { %v836_v63 = vpop.f32.mrf.mxu3  ;;  %1348 = vst [vmem:[#allocation5 + $0x88] sm:$0xff] %v1164_v3 }
 0x182   :  { %v837_v4 = vadd.f32 %v836_v63, %v2008_v5  ;;  %v959_v6 = vpop.f32.mrf.mxu2 }
 0x183   :  { %v880_v7 = vpop.f32.mrf.mxu0  ;;  %v960_v9 = vadd.f32 %v959_v6, %v2008_v5  ;;  %v921_v14 = vpop.f32.mrf.mxu1 }
 0x184   :  { %v1162_v8 = vmax.f32 %v837_v4, 0.0  ;;  %v881_v13 = vadd.f32 %v880_v7, %v2020_v11  ;;  %v922_v17 = vadd.f32 %v921_v14, %v2020_v11 }
 0x185   :  { %v1165_v18 = vmax.f32 %v960_v9, 0.0 }
 0x186   :  { %1346 = vst [vmem:[#allocation5 + $0x78] sm:$0xff] %v1162_v8  ;;  %v1186_v30 = vmax.f32 %v881_v13, 0.0  ;;  %v1187_v19 = vmax.f32 %v922_v17, 0.0 }
 0x187   :  { %1349 = vst [vmem:[#allocation5 + $0x90] sm:$0xff] %v1165_v18 }
 0x188   :  { %1371 = vst [vmem:[#allocation5 + $0x138] sm:$0xff] %v1186_v30 }
 0x189   :  { %v839_v20 = vpop.f32.mrf.mxu3  ;;  %1372 = vst [vmem:[#allocation5 + $0x140] sm:$0xff] %v1187_v19 }
 0x18a   :  { %v840_v21 = vadd.f32 %v839_v20, %v2020_v11  ;;  %v962_v23 = vpop.f32.mrf.mxu2 }
 0x18b   :  { %v883_v24 = vpop.f32.mrf.mxu0  ;;  %v963_v27 = vadd.f32 %v962_v23, %v2020_v11  ;;  %v924_v46 = vpop.f32.mrf.mxu1 }
 0x18c   :  { %v1185_v25 = vmax.f32 %v840_v21, 0.0  ;;  %v884_v28 = vadd.f32 %v883_v24, %v2010_v10  ;;  %v925_v31 = vadd.f32 %v924_v46, %v2010_v10 }
 0x18d   :  { %v1188_v48 = vmax.f32 %v963_v27, 0.0 }
 0x18e   :  { %1370 = vst [vmem:[#allocation5 + $0x130] sm:$0xff] %v1185_v25  ;;  %v1209_v32 = vmax.f32 %v884_v28, 0.0  ;;  %v1210_v33 = vmax.f32 %v925_v31, 0.0 }
 0x18f   :  { %1373 = vst [vmem:[#allocation5 + $0x148] sm:$0xff] %v1188_v48 }
 0x190   :  { %1394 = vst [vmem:[#allocation5 + $0x1f0] sm:$0xff] %v1209_v32 }
 0x191   :  { %v842_v15 = vpop.f32.mrf.mxu3  ;;  %1395 = vst [vmem:[#allocation5 + $0x1f8] sm:$0xff] %v1210_v33 }
 0x192   :  { %v843_v36 = vadd.f32 %v842_v15, %v2010_v10  ;;  %v965_v38 = vpop.f32.mrf.mxu2 }
 0x193   :  { %v886_v39 = vpop.f32.mrf.mxu0  ;;  %v966_v42 = vadd.f32 %v965_v38, %v2010_v10  ;;  %v927_v34 = vpop.f32.mrf.mxu1 }
 0x194   :  { %v1208_v40 = vmax.f32 %v843_v36, 0.0  ;;  %v887_v43 = vadd.f32 %v886_v39, %v2024_v22  ;;  %v928_v44 = vadd.f32 %v927_v34, %v2024_v22 }
 0x195   :  { %v1211_v45 = vmax.f32 %v966_v42, 0.0 }
 0x196   :  { %1393 = vst [vmem:[#allocation5 + $0x1e8] sm:$0xff] %v1208_v40  ;;  %v1232_v47 = vmax.f32 %v887_v43, 0.0  ;;  %v1233_v49 = vmax.f32 %v928_v44, 0.0 }
 0x197   :  { %1396 = vst [vmem:[#allocation5 + $0x200] sm:$0xff] %v1211_v45 }
 0x198   :  { %1417 = vst [vmem:[#allocation5 + $0x2a8] sm:$0xff] %v1232_v47 }
 0x199   :  { %v845_v51 = vpop.f32.mrf.mxu3  ;;  %1418 = vst [vmem:[#allocation5 + $0x2b0] sm:$0xff] %v1233_v49 }
 0x19a   :  { %v846_v50 = vadd.f32 %v845_v51, %v2024_v22  ;;  %v968_v53 = vpop.f32.mrf.mxu2 }
 0x19b   :  { %v889_v54 = vpop.f32.mrf.mxu0  ;;  %v969_v55 = vadd.f32 %v968_v53, %v2024_v22  ;;  %v930_v52 = vpop.f32.mrf.mxu1 }
 0x19c   :  { %v1231_v29 = vmax.f32 %v846_v50, 0.0  ;;  %v890_v56 = vadd.f32 %v889_v54, %v2072_v12  ;;  %v931_v57 = vadd.f32 %v930_v52, %v2072_v12 }
 0x19d   :  { %v1234_v58 = vmax.f32 %v969_v55, 0.0 }
 0x19e   :  { %1416 = vst [vmem:[#allocation5 + $0x2a0] sm:$0xff] %v1231_v29  ;;  %v1255_v59 = vmax.f32 %v890_v56, 0.0  ;;  %v1256_v60 = vmax.f32 %v931_v57, 0.0 }
 0x19f   :  { %1419 = vst [vmem:[#allocation5 + $0x2b8] sm:$0xff] %v1234_v58 }
 0x1a0   :  { %1440 = vst [vmem:[#allocation5 + $0x360] sm:$0xff] %v1255_v59 }
 0x1a1   :  { %v848_v61 = vpop.f32.mrf.mxu3  ;;  %1441 = vst [vmem:[#allocation5 + $0x368] sm:$0xff] %v1256_v60 }
 0x1a2   :  { %v849_v62 = vadd.f32 %v848_v61, %v2072_v12  ;;  %v971_v0 = vpop.f32.mrf.mxu2 }
 0x1a3   :  { %v892_v1 = vpop.f32.mrf.mxu0  ;;  %v972_v2 = vadd.f32 %v971_v0, %v2072_v12  ;;  %v933_v3 = vpop.f32.mrf.mxu1 }
 0x1a4   :  { %v1254_v16 = vmax.f32 %v849_v62, 0.0  ;;  %v893_v35 = vadd.f32 %v892_v1, %v2088_v37  ;;  %v934_v63 = vadd.f32 %v933_v3, %v2088_v37 }
 0x1a5   :  { %v1257_v4 = vmax.f32 %v972_v2, 0.0 }
 0x1a6   :  { %1439 = vst [vmem:[#allocation5 + $0x358] sm:$0xff] %v1254_v16  ;;  %v1278_v6 = vmax.f32 %v893_v35, 0.0  ;;  %v1279_v7 = vmax.f32 %v934_v63, 0.0 }
 0x1a7   :  { %1442 = vst [vmem:[#allocation5 + $0x370] sm:$0xff] %v1257_v4 }
 0x1a8   :  { %1463 = vst [vmem:[#allocation5 + $0x418] sm:$0xff] %v1278_v6 }
 0x1a9   :  { %v851_v8 = vpop.f32.mrf.mxu3  ;;  %1464 = vst [vmem:[#allocation5 + $0x420] sm:$0xff] %v1279_v7 }
 0x1aa   :  { %v852_v9 = vadd.f32 %v851_v8, %v2088_v37  ;;  %v974_v13 = vpop.f32.mrf.mxu2 }
 0x1ab   :  { %v895_v14 = vpop.f32.mrf.mxu0  ;;  %v975_v18 = vadd.f32 %v974_v13, %v2088_v37  ;;  %v936_v19 = vpop.f32.mrf.mxu1 }
 0x1ac   :  { %v1277_v17 = vmax.f32 %v852_v9, 0.0  ;;  %v896_v30 = vadd.f32 %v895_v14, %v2034_v26  ;;  %v937_v20 = vadd.f32 %v936_v19, %v2034_v26 }
 0x1ad   :  { %v1280_v21 = vmax.f32 %v975_v18, 0.0 }
 0x1ae   :  { %1462 = vst [vmem:[#allocation5 + $0x410] sm:$0xff] %v1277_v17  ;;  %v1301_v23 = vmax.f32 %v896_v30, 0.0  ;;  %v1302_v24 = vmax.f32 %v937_v20, 0.0 }
 0x1af   :  { %1465 = vst [vmem:[#allocation5 + $0x428] sm:$0xff] %v1280_v21 }
 0x1b0   :  { %1486 = vst [vmem:[#allocation5 + $0x4d0] sm:$0xff] %v1301_v23 }
 0x1b1   :  { %v854_v25 = vpop.f32.mrf.mxu3  ;;  %1487 = vst [vmem:[#allocation5 + $0x4d8] sm:$0xff] %v1302_v24 }
 0x1b2   :  { %v855_v27 = vadd.f32 %v854_v25, %v2034_v26  ;;  %v977_v28 = vpop.f32.mrf.mxu2 }
 0x1b3   :  { %v898_v46 = vpop.f32.mrf.mxu0  ;;  %v978_v48 = vadd.f32 %v977_v28, %v2034_v26  ;;  %v939_v33 = vpop.f32.mrf.mxu1 }
 0x1b4   :  { %v1300_v31 = vmax.f32 %v855_v27, 0.0  ;;  %v899_v32 = vadd.f32 %v898_v46, %v2046_v41  ;;  %v940_v15 = vadd.f32 %v939_v33, %v2046_v41 }
 0x1b5   :  { %v1303_v36 = vmax.f32 %v978_v48, 0.0 }
 0x1b6   :  { %1485 = vst [vmem:[#allocation5 + $0x4c8] sm:$0xff] %v1300_v31  ;;  %v1324_v38 = vmax.f32 %v899_v32, 0.0  ;;  %v1325_v39 = vmax.f32 %v940_v15, 0.0 }
 0x1b7   :  { %1488 = vst [vmem:[#allocation5 + $0x4e0] sm:$0xff] %v1303_v36 }
 0x1b8   :  { %1509 = vst [vmem:[#allocation5 + $0x588] sm:$0xff] %v1324_v38 }
 0x1b9   :  { %v857_v40 = vpop.f32.mrf.mxu3  ;;  %1510 = vst [vmem:[#allocation5 + $0x590] sm:$0xff] %v1325_v39 }
 0x1ba   :  { %v858_v42 = vadd.f32 %v857_v40, %v2046_v41  ;;  %v980_v43 = vpop.f32.mrf.mxu2 }
 0x1bb   :  { %v1041_v34 = vpop.f32.mrf.mxu0  ;;  %v981_v45 = vadd.f32 %v980_v43, %v2046_v41  ;;  %v1082_v49 = vpop.f32.mrf.mxu1 }
 0x1bc   :  { %v1323_v44 = vmax.f32 %v858_v42, 0.0  ;;  %v1042_v47 = vadd.f32 %v1041_v34, %v2008_v5  ;;  %v1083_v51 = vadd.f32 %v1082_v49, %v2008_v5 }
 0x1bd   :  { %v1326_v50 = vmax.f32 %v981_v45, 0.0 }
 0x1be   :  { %1508 = vst [vmem:[#allocation5 + $0x580] sm:$0xff] %v1323_v44  ;;  %v1167_v53 = vmax.f32 %v1042_v47, 0.0  ;;  %v1168_v54 = vmax.f32 %v1083_v51, 0.0 }
 0x1bf   :  { %1511 = vst [vmem:[#allocation5 + $0x598] sm:$0xff] %v1326_v50 }
 0x1c0   :  { %1351 = vst [vmem:[#allocation5 + $0xa0] sm:$0xff] %v1167_v53 }
 0x1c1   :  { %v1000_v29 = vpop.f32.mrf.mxu3  ;;  %1352 = vst [vmem:[#allocation5 + $0xa8] sm:$0xff] %v1168_v54 }
 0x1c2   :  { %v1001_v55 = vadd.f32 %v1000_v29, %v2008_v5  ;;  %v1123_v56 = vpop.f32.mrf.mxu2 }
 0x1c3   :  { %v1044_v52 = vpop.f32.mrf.mxu0  ;;  %v1124_v58 = vadd.f32 %v1123_v56, %v2008_v5  ;;  %v1085_v60 = vpop.f32.mrf.mxu1 }
 0x1c4   :  { %v1166_v57 = vmax.f32 %v1001_v55, 0.0  ;;  %v1045_v59 = vadd.f32 %v1044_v52, %v2020_v11  ;;  %v1086_v61 = vadd.f32 %v1085_v60, %v2020_v11 }
 0x1c5   :  { %v1169_v62 = vmax.f32 %v1124_v58, 0.0 }
 0x1c6   :  { %1350 = vst [vmem:[#allocation5 + $0x98] sm:$0xff] %v1166_v57  ;;  %v1190_v0 = vmax.f32 %v1045_v59, 0.0  ;;  %v1191_v1 = vmax.f32 %v1086_v61, 0.0 }
 0x1c7   :  { %1354 = vst.msk [vmem:[#allocation5 + $0xb0] sm:$0xff] %vm1353_vm1, %v1169_v62 }
 0x1c8   :  { %1375 = vst [vmem:[#allocation5 + $0x158] sm:$0xff] %v1190_v0 }
 0x1c9   :  { %v1003_v16 = vpop.f32.mrf.mxu3  ;;  %1376 = vst [vmem:[#allocation5 + $0x160] sm:$0xff] %v1191_v1 }
 0x1ca   :  { %v1004_v2 = vadd.f32 %v1003_v16, %v2020_v11  ;;  %v1126_v35 = vpop.f32.mrf.mxu2 }
 0x1cb   :  { %v1047_v3 = vpop.f32.mrf.mxu0  ;;  %v1127_v63 = vadd.f32 %v1126_v35, %v2020_v11  ;;  %v1088_v6 = vpop.f32.mrf.mxu1 }
 0x1cc   :  { %v1189_v5 = vmax.f32 %v1004_v2, 0.0  ;;  %v1048_v4 = vadd.f32 %v1047_v3, %v2010_v10  ;;  %v1089_v7 = vadd.f32 %v1088_v6, %v2010_v10 }
 0x1cd   :  { %v1192_v8 = vmax.f32 %v1127_v63, 0.0 }
 0x1ce   :  { %1374 = vst [vmem:[#allocation5 + $0x150] sm:$0xff] %v1189_v5  ;;  %v1213_v9 = vmax.f32 %v1048_v4, 0.0  ;;  %v1214_v13 = vmax.f32 %v1089_v7, 0.0 }
 0x1cf   :  { %1377 = vst.msk [vmem:[#allocation5 + $0x168] sm:$0xff] %vm1353_vm1, %v1192_v8 }
 0x1d0   :  { %1398 = vst [vmem:[#allocation5 + $0x210] sm:$0xff] %v1213_v9 }
 0x1d1   :  { %v1006_v14 = vpop.f32.mrf.mxu3  ;;  %1399 = vst [vmem:[#allocation5 + $0x218] sm:$0xff] %v1214_v13 }
 0x1d2   :  { %v1007_v17 = vadd.f32 %v1006_v14, %v2010_v10  ;;  %v1129_v18 = vpop.f32.mrf.mxu2 }
 0x1d3   :  { %v1050_v30 = vpop.f32.mrf.mxu0  ;;  %v1130_v11 = vadd.f32 %v1129_v18, %v2010_v10  ;;  %v1091_v21 = vpop.f32.mrf.mxu1 }
 0x1d4   :  { %v1212_v19 = vmax.f32 %v1007_v17, 0.0  ;;  %v1051_v20 = vadd.f32 %v1050_v30, %v2024_v22  ;;  %v1092_v23 = vadd.f32 %v1091_v21, %v2024_v22 }
 0x1d5   :  { %v1215_v24 = vmax.f32 %v1130_v11, 0.0 }
 0x1d6   :  { %1397 = vst [vmem:[#allocation5 + $0x208] sm:$0xff] %v1212_v19  ;;  %v1236_v25 = vmax.f32 %v1051_v20, 0.0  ;;  %v1237_v27 = vmax.f32 %v1092_v23, 0.0 }
 0x1d7   :  { %1400 = vst.msk [vmem:[#allocation5 + $0x220] sm:$0xff] %vm1353_vm1, %v1215_v24 }
 0x1d8   :  { %1421 = vst [vmem:[#allocation5 + $0x2c8] sm:$0xff] %v1236_v25 }
 0x1d9   :  { %v1009_v28 = vpop.f32.mrf.mxu3  ;;  %1422 = vst [vmem:[#allocation5 + $0x2d0] sm:$0xff] %v1237_v27 }
 0x1da   :  { %v1010_v46 = vadd.f32 %v1009_v28, %v2024_v22  ;;  %v1132_v31 = vpop.f32.mrf.mxu2 }
 0x1db   :  { %v1053_v48 = vpop.f32.mrf.mxu0  ;;  %v1133_v10 = vadd.f32 %v1132_v31, %v2024_v22  ;;  %v1094_v15 = vpop.f32.mrf.mxu1 }
 0x1dc   :  { %v1235_v32 = vmax.f32 %v1010_v46, 0.0  ;;  %v1054_v33 = vadd.f32 %v1053_v48, %v2072_v12  ;;  %v1095_v36 = vadd.f32 %v1094_v15, %v2072_v12 }
 0x1dd   :  { %v1238_v38 = vmax.f32 %v1133_v10, 0.0 }
 0x1de   :  { %1420 = vst [vmem:[#allocation5 + $0x2c0] sm:$0xff] %v1235_v32  ;;  %v1259_v39 = vmax.f32 %v1054_v33, 0.0  ;;  %v1260_v40 = vmax.f32 %v1095_v36, 0.0 }
 0x1df   :  { %1423 = vst.msk [vmem:[#allocation5 + $0x2d8] sm:$0xff] %vm1353_vm1, %v1238_v38 }
 0x1e0   :  { %1444 = vst [vmem:[#allocation5 + $0x380] sm:$0xff] %v1259_v39 }
 0x1e1   :  { %v1012_v42 = vpop.f32.mrf.mxu3  ;;  %1445 = vst [vmem:[#allocation5 + $0x388] sm:$0xff] %v1260_v40 }
 0x1e2   :  { %v1013_v43 = vadd.f32 %v1012_v42, %v2072_v12  ;;  %v1135_v34 = vpop.f32.mrf.mxu2 }
 0x1e3   :  { %v1056_v44 = vpop.f32.mrf.mxu0  ;;  %v1136_v22 = vadd.f32 %v1135_v34, %v2072_v12  ;;  %v1097_v49 = vpop.f32.mrf.mxu1 }
 0x1e4   :  { %v1258_v45 = vmax.f32 %v1013_v43, 0.0  ;;  %v1057_v47 = vadd.f32 %v1056_v44, %v2088_v37  ;;  %v1098_v51 = vadd.f32 %v1097_v49, %v2088_v37 }
 0x1e5   :  { %v1261_v50 = vmax.f32 %v1136_v22, 0.0 }
 0x1e6   :  { %1443 = vst [vmem:[#allocation5 + $0x378] sm:$0xff] %v1258_v45  ;;  %v1282_v53 = vmax.f32 %v1057_v47, 0.0  ;;  %v1283_v54 = vmax.f32 %v1098_v51, 0.0 }
 0x1e7   :  { %1446 = vst.msk [vmem:[#allocation5 + $0x390] sm:$0xff] %vm1353_vm1, %v1261_v50 }
 0x1e8   :  { %1467 = vst [vmem:[#allocation5 + $0x438] sm:$0xff] %v1282_v53 }
 0x1e9   :  { %v1015_v29 = vpop.f32.mrf.mxu3  ;;  %1468 = vst [vmem:[#allocation5 + $0x440] sm:$0xff] %v1283_v54 }
 0x1ea   :  { %v1016_v55 = vadd.f32 %v1015_v29, %v2088_v37  ;;  %v1138_v56 = vpop.f32.mrf.mxu2 }
 0x1eb   :  { %v1059_v52 = vpop.f32.mrf.mxu0  ;;  %v1139_v12 = vadd.f32 %v1138_v56, %v2088_v37  ;;  %v1100_v59 = vpop.f32.mrf.mxu1 }
 0x1ec   :  { %v1281_v57 = vmax.f32 %v1016_v55, 0.0  ;;  %v1060_v58 = vadd.f32 %v1059_v52, %v2034_v26  ;;  %v1101_v60 = vadd.f32 %v1100_v59, %v2034_v26 }
 0x1ed   :  { %v1284_v61 = vmax.f32 %v1139_v12, 0.0 }
 0x1ee   :  { %1466 = vst [vmem:[#allocation5 + $0x430] sm:$0xff] %v1281_v57  ;;  %v1305_v62 = vmax.f32 %v1060_v58, 0.0  ;;  %v1306_v0 = vmax.f32 %v1101_v60, 0.0 }
 0x1ef   :  { %1469 = vst.msk [vmem:[#allocation5 + $0x448] sm:$0xff] %vm1353_vm1, %v1284_v61 }
 0x1f0   :  { %1490 = vst [vmem:[#allocation5 + $0x4f0] sm:$0xff] %v1305_v62 }
 0x1f1   :  { %v1018_v1 = vpop.f32.mrf.mxu3  ;;  %1491 = vst [vmem:[#allocation5 + $0x4f8] sm:$0xff] %v1306_v0 }
 0x1f2   :  { %v1019_v16 = vadd.f32 %v1018_v1, %v2034_v26  ;;  %v1141_v2 = vpop.f32.mrf.mxu2 }
 0x1f3   :  { %v1062_v35 = vpop.f32.mrf.mxu0  ;;  %v1142_v37 = vadd.f32 %v1141_v2, %v2034_v26  ;;  %v1103_v63 = vpop.f32.mrf.mxu1 }
 0x1f4   :  { %v1304_v3 = vmax.f32 %v1019_v16, 0.0  ;;  %v1063_v5 = vadd.f32 %v1062_v35, %v2046_v41  ;;  %v1104_v4 = vadd.f32 %v1103_v63, %v2046_v41 }
 0x1f5   :  { %v1307_v6 = vmax.f32 %v1142_v37, 0.0 }
 0x1f6   :  { %1489 = vst [vmem:[#allocation5 + $0x4e8] sm:$0xff] %v1304_v3  ;;  %v1328_v7 = vmax.f32 %v1063_v5, 0.0  ;;  %v1329_v8 = vmax.f32 %v1104_v4, 0.0 }
 0x1f7   :  { %1492 = vst.msk [vmem:[#allocation5 + $0x500] sm:$0xff] %vm1353_vm1, %v1307_v6 }
 0x1f8   :  { %1513 = vst [vmem:[#allocation5 + $0x5a8] sm:$0xff] %v1328_v7 }
 0x1f9   :  { %v1021_v9 = vpop.f32.mrf.mxu3  ;;  %1514 = vst [vmem:[#allocation5 + $0x5b0] sm:$0xff] %v1329_v8 }
 0x1fa   :  { %v1022_v13 = vadd.f32 %v1021_v9, %v2046_v41  ;;  %v1144_v14 = vpop.f32.mrf.mxu2 }
 0x1fb   :  { %v1145_v17 = vadd.f32 %v1144_v14, %v2046_v41 }
 0x1fc   :  { %v1327_v26 = vmax.f32 %v1022_v13, 0.0 }
 0x1fd   :  { %v1330_v18 = vmax.f32 %v1145_v17, 0.0 }
 0x1fe   :  { %1512 = vst [vmem:[#allocation5 + $0x5a0] sm:$0xff] %v1327_v26 }
 0x1ff   :  { %1515 = vst.msk [vmem:[#allocation5 + $0x5b8] sm:$0xff] %vm1353_vm1, %v1330_v18 }
 0x200   :  { %1528 = dma.vmem_to_hbm [thread:$0]  %s1521_s12, 23552, %s1523_s15, [#allocation4], %s1794_s17, %s1794_s17, %s1795_s18  }
 0x201   :  { %1791 = dma.done.wait [#allocation4], 23552  }
 0x202   :  { %1792 = vsyncadd [#allocation4], 4294943744 }
 0x203   :  { %1533 = vsyncpa [#allocation3], 1 }
 0x204   :  { %1534 = vsyncpa [#allocation4], 1 }

</bundles_post_ra>
